<compile_context>
chip_gen: v7x
topology: tpu7x:2x2x1
jax: 0.10.0
libtpu: 0.0.40
codegen_flags: <defaults>
</compile_context>

<pallas_src>
import functools

import jax
import jax.numpy as jnp
from jax.experimental import pallas as pl
from jax.experimental.pallas import tpu as pltpu

LANES = 128               # lane width (last dim); one sample per lane
MAX_ROWS_PER_TILE = 256   # up to 256*128 = 32K samples / grid step (~4.4 MiB block)

# Fused feature-major input block rows (per sample -> one lane):
#   6 used predicted params (theta_o, mu_o; psi_o cancels analytically out of
#   Q^dag diag(mu,-mu) Q and is not transferred), 18 ground-truth expectations,
#   4 Re(U) entries, 4 Im(U) entries.
_N_PAR = 6
_N_EXP = 18
_OFF_PAR = 0
_OFF_EXP = _OFF_PAR + _N_PAR
_OFF_URE = _OFF_EXP + _N_EXP
_OFF_UIM = _OFF_URE + 4
N_FEAT = _OFF_UIM + 4      # 32
_PARAM_COLS = (1, 2, 4, 5, 7, 8)   # (theta_x, mu_x, theta_y, mu_y, theta_z, mu_z)


# --------------------------------- kernel ---------------------------------
def _loss_kernel(data_ref, out_ref, *, batch):
    _, S, L = data_ref.shape

    def feat(f):
        # One lane-dense (S, 128) feature slab; upcast in case of bf16 transfer.
        return data_ref[f].astype(jnp.float32)

    # ---- Bloch rows of W_a = U sigma_a U^dag (Hermitian, traceless) ----
    # Only the x and z components of each W_a are needed because g_y = 0.
    a0r, a1r, a2r, a3r = (feat(_OFF_URE + k) for k in range(4))
    a0i, a1i, a2i, a3i = (feat(_OFF_UIM + k) for k in range(4))

    p10_re = a1r * a0r + a1i * a0i          # u01 * conj(u00)
    p10_im = a1i * a0r - a1r * a0i
    p12_re = a1r * a2r + a1i * a2i          # u01 * conj(u10)
    p12_im = a1i * a2r - a1r * a2i
    p03_re = a0r * a3r + a0i * a3i          # u00 * conj(u11)
    p03_im = a0i * a3r - a0r * a3i

    r_xx = p12_re + p03_re                  # W_a = r_ax sx + r_ay sy + r_az sz
    r_xz = p10_re + p10_re
    r_yx = p03_im - p12_im
    r_yz = -(p10_im + p10_im)
    r_zx = (a0r * a2r + a0i * a2i) - (a1r * a3r + a1i * a3i)
    r_zz = (a0r * a0r + a0i * a0i) - (a1r * a1r + a1i * a1i)
    R = ((r_xx, r_xz), (r_yx, r_yz), (r_zx, r_zz))

    # ---- 18 BCE terms, combined per (+a, -a) state pair ----
    # G_o = Q^dag diag(mu,-mu) Q  ->  Bloch vector g = mu*(-sin2th, 0, cos2th)
    # (psi cancels).  e_{o,a,+/-} = +/- (g_o . r_a),  p = 0.5 +/- d,
    # d = 0.5*(g_o . r_a),  and 1 - p_+ = p_-, so each pair shares its logs:
    #   bce(+)+bce(-) = -( (1+s) log p_+ + (1-s) log p_- ),
    #   s = 0.5*(exp_+ - exp_-).
    per_obs = []
    for o in range(3):
        theta = feat(_OFF_PAR + 2 * o)
        mu = feat(_OFF_PAR + 2 * o + 1)
        two_theta = theta + theta
        half_mu = 0.5 * mu
        gx2 = -half_mu * jnp.sin(two_theta)   # 0.5 * g_x
        gz2 = half_mu * jnp.cos(two_theta)    # 0.5 * g_z
        acc = None
        for a in range(3):
            r_ax, r_az = R[a]
            d = jnp.clip(gx2 * r_ax + gz2 * r_az, -0.5, 0.5)
            lp = jnp.maximum(jnp.log(0.5 + d), -100.0)   # torch BCELoss clamp
            lm = jnp.maximum(jnp.log(0.5 - d), -100.0)
            row = _OFF_EXP + o * 6 + 2 * a
            s = 0.5 * (feat(row) - feat(row + 1))
            pair = (lp + lm) + s * (lp - lm)
            acc = pair if acc is None else acc + pair
        per_obs.append(acc)
    total = -(per_obs[0] + per_obs[1] + per_obs[2])   # sum of 18 BCE terms

    # ---- mask padded samples, partial-reduce in-kernel ----
    row_ids = jax.lax.broadcasted_iota(jnp.int32, (S, L), 0)
    lane_ids = jax.lax.broadcasted_iota(jnp.int32, (S, L), 1)
    gidx = (pl.program_id(0) * S + row_ids) * L + lane_ids
    total = jnp.where(gidx < batch, total, 0.0)

    part = total[0:8, :]
    for k in range(1, S // 8):
        part = part + total[8 * k:8 * (k + 1), :]
    out_ref[...] = part                                # (8, 128) per tile


# --------------------------------- wrapper ---------------------------------
def _choose_tiling(batch):
    """Pick (sublane rows per tile, num tiles); >=2 tiles whenever possible."""
    rows = -(-batch // LANES)
    rows8 = max(8, ((rows + 7) // 8) * 8)
    if rows8 <= 8:
        return 8, 1          # cannot split below one (8,128) tile
    s = max(8, min(MAX_ROWS_PER_TILE, ((rows8 // 2 + 7) // 8) * 8))
    return s, -(-rows8 // s)


def expectation_based_loss(y_pred_parameters, expectations, control_unitaries,
                           *, transfer_dtype=jnp.float32):
    B = y_pred_parameters.shape[0]
    n_exp = expectations.shape[1]   # 18

    S, num_tiles = _choose_tiling(B)
    rows_p = num_tiles * S
    Bp = rows_p * LANES

    # Fused feature-major (N_FEAT, rows_p, 128) block -> one DMA per grid step.
    # transfer_dtype=jnp.bfloat16 halves HBM bytes (useful on v5e) at ~1e-3
    # angle precision cost.
    # TODO(synk): an upstream producer emitting feature-major activations would
    # remove this transpose/pad pass (one extra HBM round-trip).
    dt = transfer_dtype
    u_flat = control_unitaries.reshape(B, 4)                         # row-major 2x2
    params_used = y_pred_parameters[:, jnp.asarray(_PARAM_COLS)]     # theta/mu only
    feats = jnp.concatenate(
        [params_used.astype(dt),
         expectations.astype(dt),
         jnp.real(u_flat).astype(dt),
         jnp.imag(u_flat).astype(dt)], axis=1)                       # (B, 32)
    if Bp > B:
        feats = jnp.pad(feats, ((0, Bp - B), (0, 0)))
    data = jnp.transpose(feats).reshape(N_FEAT, rows_p, LANES)

    out = pl.pallas_call(
        functools.partial(_loss_kernel, batch=B),
        out_shape=jax.ShapeDtypeStruct((num_tiles * 8, LANES), jnp.float32),
        grid_spec=pltpu.PrefetchScalarGridSpec(
            num_scalar_prefetch=0,
            grid=(num_tiles,),
            in_specs=[pl.BlockSpec((N_FEAT, S, LANES), lambda i: (0, i, 0))],
            out_specs=pl.BlockSpec((8, LANES), lambda i: (i, 0)),
        ),
        compiler_params=pltpu.CompilerParams(
            dimension_semantics=("parallel",)),
    )(data)

    return jnp.sum(out) / jnp.float32(B * n_exp)


# ------------------------------ pure-JAX reference ------------------------------
def reference_loss(params, expectations, U):
    sx = jnp.array([[0, 1], [1, 0]], jnp.complex64)
    sy = jnp.array([[0, -1j], [1j, 0]], jnp.complex64)
    sz = jnp.array([[1, 0], [0, -1]], jnp.complex64)
    paulis = [sx, sy, sz]
    I2 = jnp.eye(2, dtype=jnp.complex64)
    B = params.shape[0]
    Ud = jnp.conjugate(jnp.swapaxes(U, -1, -2))
    preds = []
    for o in range(3):
        psi = params[:, 3 * o + 0].astype(jnp.float32)
        th = params[:, 3 * o + 1].astype(jnp.float32)
        mu = params[:, 3 * o + 2].astype(jnp.complex64)
        emp = jnp.exp(-1j * psi.astype(jnp.complex64))
        epp = jnp.exp(1j * psi.astype(jnp.complex64))
        ct = jnp.cos(th).astype(jnp.complex64)
        st = jnp.sin(th).astype(jnp.complex64)
        Q = jnp.stack([jnp.stack([emp * ct, -emp * st], -1),
                       jnp.stack([epp * st, epp * ct], -1)], -2)
        D = jnp.zeros((B, 2, 2), jnp.complex64)
        D = D.at[:, 0, 0].set(mu).at[:, 1, 1].set(-mu)
        G = jnp.einsum('bij,bjk,bkl->bil',
                       jnp.conjugate(jnp.swapaxes(Q, -1, -2)), D, Q)
        VO = jnp.einsum('ij,bjk->bik', paulis[o], G)
        for a in range(3):
            for s in (1.0, -1.0):
                rho = 0.5 * (I2[None] + s * paulis[a][None])
                rho_f = jnp.einsum('bij,bjk,bkl->bil', U, rho, Ud)
                e = jnp.real(jnp.einsum('bij,bjk,ki->b', VO, rho_f, paulis[o]))
                preds.append(e)
    pred = jnp.stack(preds, axis=1)  # (B, 18)
    p = jnp.clip((pred + 1.0) * 0.5, 0.0, 1.0)
    t = (expectations + 1.0) * 0.5
    logp = jnp.maximum(jnp.log(p), -100.0)
    log1p = jnp.maximum(jnp.log(1.0 - p), -100.0)
    return jnp.mean(-(t * logp + (1.0 - t) * log1p))


if __name__ == "__main__":
    B = 6
    key = jax.random.PRNGKey(0)
    k1, k2, k3, k4 = jax.random.split(key, 4)

    # Predicted parameters: (psi_x, theta_x, mu_x, ..., mu_z); tanh keeps |mu|<1.
    y_pred_parameters = jnp.tanh(jax.random.normal(k1, (B, 9), jnp.float32))
    # Ground-truth expectation values strictly inside (-1, 1).
    expectations = 0.95 * jnp.tanh(jax.random.normal(k2, (B, 18), jnp.float32))

    # Random single-qubit control unitaries U = cos(a) I - i sin(a) (n . sigma).
    sx = jnp.array([[0, 1], [1, 0]], jnp.complex64)
    sy = jnp.array([[0, -1j], [1j, 0]], jnp.complex64)
    sz = jnp.array([[1, 0], [0, -1]], jnp.complex64)
    alpha = jax.random.uniform(k3, (B,), minval=0.0, maxval=jnp.pi)
    n = jax.random.normal(k4, (B, 3), jnp.float32)
    n = n / jnp.linalg.norm(n, axis=1, keepdims=True)
    ca = jnp.cos(alpha)[:, None, None].astype(jnp.complex64)
    sa = jnp.sin(alpha)[:, None, None].astype(jnp.complex64)
    nsig = (n[:, 0, None, None] * sx + n[:, 1, None, None] * sy
            + n[:, 2, None, None] * sz).astype(jnp.complex64)
    control_unitaries = ca * jnp.eye(2, dtype=jnp.complex64)[None] - 1j * sa * nsig

    loss = jax.block_until_ready(
        expectation_based_loss(y_pred_parameters, expectations, control_unitaries))
    ref = jax.block_until_ready(
        reference_loss(y_pred_parameters, expectations, control_unitaries))

    assert jnp.isfinite(loss), "loss is not finite"
    assert abs(float(loss) - float(ref)) < 2e-3, (float(loss), float(ref))
    print("KERNEL_OK")
</pallas_src>

<mosaic_0001>
module attributes {stable_mosaic.version = 11 : i64} {
  func.func @_loss_kernel(%arg0: i32, %arg1: memref<32x8x128xf32, #tpu.memory_space<vmem>>, %arg2: memref<8x128xf32, #tpu.memory_space<vmem>>) attributes {dimension_semantics = [#tpu.dimension_semantics<parallel>], iteration_bounds = array<i64: 1>, scalar_prefetch = 0 : i64, scratch_operands = 0 : i64, tpu.core_type = #tpu.core_type<tc>, window_params = [{transform_indices = @transform_0, window_bounds = array<i64: 32, 8, 128>}, {transform_indices = @transform_1, window_bounds = array<i64: 8, 128>}]} {
    %c24 = arith.constant 24 : index
    %c0 = arith.constant 0 : index
    %c0_0 = arith.constant 0 : index
    %0 = vector.load %arg1[%c24, %c0, %c0_0] : memref<32x8x128xf32, #tpu.memory_space<vmem>>, vector<1x8x128xf32>
    %1 = vector.shape_cast %0 : vector<1x8x128xf32> to vector<8x128xf32>
    %c25 = arith.constant 25 : index
    %c0_1 = arith.constant 0 : index
    %c0_2 = arith.constant 0 : index
    %2 = vector.load %arg1[%c25, %c0_1, %c0_2] : memref<32x8x128xf32, #tpu.memory_space<vmem>>, vector<1x8x128xf32>
    %3 = vector.shape_cast %2 : vector<1x8x128xf32> to vector<8x128xf32>
    %c26 = arith.constant 26 : index
    %c0_3 = arith.constant 0 : index
    %c0_4 = arith.constant 0 : index
    %4 = vector.load %arg1[%c26, %c0_3, %c0_4] : memref<32x8x128xf32, #tpu.memory_space<vmem>>, vector<1x8x128xf32>
    %5 = vector.shape_cast %4 : vector<1x8x128xf32> to vector<8x128xf32>
    %c27 = arith.constant 27 : index
    %c0_5 = arith.constant 0 : index
    %c0_6 = arith.constant 0 : index
    %6 = vector.load %arg1[%c27, %c0_5, %c0_6] : memref<32x8x128xf32, #tpu.memory_space<vmem>>, vector<1x8x128xf32>
    %7 = vector.shape_cast %6 : vector<1x8x128xf32> to vector<8x128xf32>
    %c28 = arith.constant 28 : index
    %c0_7 = arith.constant 0 : index
    %c0_8 = arith.constant 0 : index
    %8 = vector.load %arg1[%c28, %c0_7, %c0_8] : memref<32x8x128xf32, #tpu.memory_space<vmem>>, vector<1x8x128xf32>
    %9 = vector.shape_cast %8 : vector<1x8x128xf32> to vector<8x128xf32>
    %c29 = arith.constant 29 : index
    %c0_9 = arith.constant 0 : index
    %c0_10 = arith.constant 0 : index
    %10 = vector.load %arg1[%c29, %c0_9, %c0_10] : memref<32x8x128xf32, #tpu.memory_space<vmem>>, vector<1x8x128xf32>
    %11 = vector.shape_cast %10 : vector<1x8x128xf32> to vector<8x128xf32>
    %c30 = arith.constant 30 : index
    %c0_11 = arith.constant 0 : index
    %c0_12 = arith.constant 0 : index
    %12 = vector.load %arg1[%c30, %c0_11, %c0_12] : memref<32x8x128xf32, #tpu.memory_space<vmem>>, vector<1x8x128xf32>
    %13 = vector.shape_cast %12 : vector<1x8x128xf32> to vector<8x128xf32>
    %c31 = arith.constant 31 : index
    %c0_13 = arith.constant 0 : index
    %c0_14 = arith.constant 0 : index
    %14 = vector.load %arg1[%c31, %c0_13, %c0_14] : memref<32x8x128xf32, #tpu.memory_space<vmem>>, vector<1x8x128xf32>
    %15 = vector.shape_cast %14 : vector<1x8x128xf32> to vector<8x128xf32>
    %16 = arith.mulf %3, %1 : vector<8x128xf32>
    %17 = arith.mulf %11, %9 : vector<8x128xf32>
    %18 = arith.addf %16, %17 : vector<8x128xf32>
    %19 = arith.mulf %11, %1 : vector<8x128xf32>
    %20 = arith.mulf %3, %9 : vector<8x128xf32>
    %21 = arith.subf %19, %20 : vector<8x128xf32>
    %22 = arith.mulf %3, %5 : vector<8x128xf32>
    %23 = arith.mulf %11, %13 : vector<8x128xf32>
    %24 = arith.addf %22, %23 : vector<8x128xf32>
    %25 = arith.mulf %11, %5 : vector<8x128xf32>
    %26 = arith.mulf %3, %13 : vector<8x128xf32>
    %27 = arith.subf %25, %26 : vector<8x128xf32>
    %28 = arith.mulf %1, %7 : vector<8x128xf32>
    %29 = arith.mulf %9, %15 : vector<8x128xf32>
    %30 = arith.addf %28, %29 : vector<8x128xf32>
    %31 = arith.mulf %9, %7 : vector<8x128xf32>
    %32 = arith.mulf %1, %15 : vector<8x128xf32>
    %33 = arith.subf %31, %32 : vector<8x128xf32>
    %34 = arith.addf %24, %30 : vector<8x128xf32>
    %35 = arith.addf %18, %18 : vector<8x128xf32>
    %36 = arith.subf %33, %27 : vector<8x128xf32>
    %37 = arith.addf %21, %21 : vector<8x128xf32>
    %cst = arith.constant 0.000000e+00 : f32
    %38 = vector.broadcast %cst : f32 to vector<8x128xf32>
    %39 = arith.subf %38, %37 : vector<8x128xf32>
    %40 = arith.mulf %1, %5 : vector<8x128xf32>
    %41 = arith.mulf %9, %13 : vector<8x128xf32>
    %42 = arith.addf %40, %41 : vector<8x128xf32>
    %43 = arith.mulf %3, %7 : vector<8x128xf32>
    %44 = arith.mulf %11, %15 : vector<8x128xf32>
    %45 = arith.addf %43, %44 : vector<8x128xf32>
    %46 = arith.subf %42, %45 : vector<8x128xf32>
    %47 = arith.mulf %1, %1 : vector<8x128xf32>
    %48 = arith.mulf %9, %9 : vector<8x128xf32>
    %49 = arith.addf %47, %48 : vector<8x128xf32>
    %50 = arith.mulf %3, %3 : vector<8x128xf32>
    %51 = arith.mulf %11, %11 : vector<8x128xf32>
    %52 = arith.addf %50, %51 : vector<8x128xf32>
    %53 = arith.subf %49, %52 : vector<8x128xf32>
    %c0_15 = arith.constant 0 : index
    %c0_16 = arith.constant 0 : index
    %c0_17 = arith.constant 0 : index
    %54 = vector.load %arg1[%c0_15, %c0_16, %c0_17] : memref<32x8x128xf32, #tpu.memory_space<vmem>>, vector<1x8x128xf32>
    %55 = vector.shape_cast %54 : vector<1x8x128xf32> to vector<8x128xf32>
    %c1 = arith.constant 1 : index
    %c0_18 = arith.constant 0 : index
    %c0_19 = arith.constant 0 : index
    %56 = vector.load %arg1[%c1, %c0_18, %c0_19] : memref<32x8x128xf32, #tpu.memory_space<vmem>>, vector<1x8x128xf32>
    %57 = vector.shape_cast %56 : vector<1x8x128xf32> to vector<8x128xf32>
    %58 = arith.addf %55, %55 : vector<8x128xf32>
    %cst_20 = arith.constant 5.000000e-01 : f32
    %59 = vector.broadcast %cst_20 : f32 to vector<8x128xf32>
    %60 = arith.mulf %59, %57 : vector<8x128xf32>
    %cst_21 = arith.constant 0.000000e+00 : f32
    %61 = vector.broadcast %cst_21 : f32 to vector<8x128xf32>
    %62 = arith.subf %61, %60 : vector<8x128xf32>
    %63 = math.sin %58 : vector<8x128xf32>
    %64 = arith.mulf %62, %63 : vector<8x128xf32>
    %65 = math.cos %58 : vector<8x128xf32>
    %66 = arith.mulf %60, %65 : vector<8x128xf32>
    %67 = arith.mulf %64, %34 : vector<8x128xf32>
    %68 = arith.mulf %66, %35 : vector<8x128xf32>
    %69 = arith.addf %67, %68 : vector<8x128xf32>
    %cst_22 = arith.constant -5.000000e-01 : f32
    %cst_23 = arith.constant 5.000000e-01 : f32
    %70 = vector.broadcast %cst_22 : f32 to vector<8x128xf32>
    %71 = arith.maximumf %70, %69 : vector<8x128xf32>
    %72 = vector.broadcast %cst_23 : f32 to vector<8x128xf32>
    %73 = arith.minimumf %72, %71 : vector<8x128xf32>
    %cst_24 = arith.constant 5.000000e-01 : f32
    %74 = vector.broadcast %cst_24 : f32 to vector<8x128xf32>
    %75 = arith.addf %74, %73 : vector<8x128xf32>
    %76 = math.log %75 : vector<8x128xf32>
    %cst_25 = arith.constant -1.000000e+02 : f32
    %77 = vector.broadcast %cst_25 : f32 to vector<8x128xf32>
    %78 = arith.maximumf %76, %77 : vector<8x128xf32>
    %cst_26 = arith.constant 5.000000e-01 : f32
    %79 = vector.broadcast %cst_26 : f32 to vector<8x128xf32>
    %80 = arith.subf %79, %73 : vector<8x128xf32>
    %81 = math.log %80 : vector<8x128xf32>
    %cst_27 = arith.constant -1.000000e+02 : f32
    %82 = vector.broadcast %cst_27 : f32 to vector<8x128xf32>
    %83 = arith.maximumf %81, %82 : vector<8x128xf32>
    %c6 = arith.constant 6 : index
    %c0_28 = arith.constant 0 : index
    %c0_29 = arith.constant 0 : index
    %84 = vector.load %arg1[%c6, %c0_28, %c0_29] : memref<32x8x128xf32, #tpu.memory_space<vmem>>, vector<1x8x128xf32>
    %85 = vector.shape_cast %84 : vector<1x8x128xf32> to vector<8x128xf32>
    %c7 = arith.constant 7 : index
    %c0_30 = arith.constant 0 : index
    %c0_31 = arith.constant 0 : index
    %86 = vector.load %arg1[%c7, %c0_30, %c0_31] : memref<32x8x128xf32, #tpu.memory_space<vmem>>, vector<1x8x128xf32>
    %87 = vector.shape_cast %86 : vector<1x8x128xf32> to vector<8x128xf32>
    %88 = arith.subf %85, %87 : vector<8x128xf32>
    %cst_32 = arith.constant 5.000000e-01 : f32
    %89 = vector.broadcast %cst_32 : f32 to vector<8x128xf32>
    %90 = arith.mulf %89, %88 : vector<8x128xf32>
    %91 = arith.addf %78, %83 : vector<8x128xf32>
    %92 = arith.subf %78, %83 : vector<8x128xf32>
    %93 = arith.mulf %90, %92 : vector<8x128xf32>
    %94 = arith.addf %91, %93 : vector<8x128xf32>
    %95 = arith.mulf %64, %36 : vector<8x128xf32>
    %96 = arith.mulf %66, %39 : vector<8x128xf32>
    %97 = arith.addf %95, %96 : vector<8x128xf32>
    %cst_33 = arith.constant -5.000000e-01 : f32
    %cst_34 = arith.constant 5.000000e-01 : f32
    %98 = vector.broadcast %cst_33 : f32 to vector<8x128xf32>
    %99 = arith.maximumf %98, %97 : vector<8x128xf32>
    %100 = vector.broadcast %cst_34 : f32 to vector<8x128xf32>
    %101 = arith.minimumf %100, %99 : vector<8x128xf32>
    %cst_35 = arith.constant 5.000000e-01 : f32
    %102 = vector.broadcast %cst_35 : f32 to vector<8x128xf32>
    %103 = arith.addf %102, %101 : vector<8x128xf32>
    %104 = math.log %103 : vector<8x128xf32>
    %cst_36 = arith.constant -1.000000e+02 : f32
    %105 = vector.broadcast %cst_36 : f32 to vector<8x128xf32>
    %106 = arith.maximumf %104, %105 : vector<8x128xf32>
    %cst_37 = arith.constant 5.000000e-01 : f32
    %107 = vector.broadcast %cst_37 : f32 to vector<8x128xf32>
    %108 = arith.subf %107, %101 : vector<8x128xf32>
    %109 = math.log %108 : vector<8x128xf32>
    %cst_38 = arith.constant -1.000000e+02 : f32
    %110 = vector.broadcast %cst_38 : f32 to vector<8x128xf32>
    %111 = arith.maximumf %109, %110 : vector<8x128xf32>
    %c8 = arith.constant 8 : index
    %c0_39 = arith.constant 0 : index
    %c0_40 = arith.constant 0 : index
    %112 = vector.load %arg1[%c8, %c0_39, %c0_40] : memref<32x8x128xf32, #tpu.memory_space<vmem>>, vector<1x8x128xf32>
    %113 = vector.shape_cast %112 : vector<1x8x128xf32> to vector<8x128xf32>
    %c9 = arith.constant 9 : index
    %c0_41 = arith.constant 0 : index
    %c0_42 = arith.constant 0 : index
    %114 = vector.load %arg1[%c9, %c0_41, %c0_42] : memref<32x8x128xf32, #tpu.memory_space<vmem>>, vector<1x8x128xf32>
    %115 = vector.shape_cast %114 : vector<1x8x128xf32> to vector<8x128xf32>
    %116 = arith.subf %113, %115 : vector<8x128xf32>
    %cst_43 = arith.constant 5.000000e-01 : f32
    %117 = vector.broadcast %cst_43 : f32 to vector<8x128xf32>
    %118 = arith.mulf %117, %116 : vector<8x128xf32>
    %119 = arith.addf %106, %111 : vector<8x128xf32>
    %120 = arith.subf %106, %111 : vector<8x128xf32>
    %121 = arith.mulf %118, %120 : vector<8x128xf32>
    %122 = arith.addf %119, %121 : vector<8x128xf32>
    %123 = arith.addf %94, %122 : vector<8x128xf32>
    %124 = arith.mulf %64, %46 : vector<8x128xf32>
    %125 = arith.mulf %66, %53 : vector<8x128xf32>
    %126 = arith.addf %124, %125 : vector<8x128xf32>
    %cst_44 = arith.constant -5.000000e-01 : f32
    %cst_45 = arith.constant 5.000000e-01 : f32
    %127 = vector.broadcast %cst_44 : f32 to vector<8x128xf32>
    %128 = arith.maximumf %127, %126 : vector<8x128xf32>
    %129 = vector.broadcast %cst_45 : f32 to vector<8x128xf32>
    %130 = arith.minimumf %129, %128 : vector<8x128xf32>
    %cst_46 = arith.constant 5.000000e-01 : f32
    %131 = vector.broadcast %cst_46 : f32 to vector<8x128xf32>
    %132 = arith.addf %131, %130 : vector<8x128xf32>
    %133 = math.log %132 : vector<8x128xf32>
    %cst_47 = arith.constant -1.000000e+02 : f32
    %134 = vector.broadcast %cst_47 : f32 to vector<8x128xf32>
    %135 = arith.maximumf %133, %134 : vector<8x128xf32>
    %cst_48 = arith.constant 5.000000e-01 : f32
    %136 = vector.broadcast %cst_48 : f32 to vector<8x128xf32>
    %137 = arith.subf %136, %130 : vector<8x128xf32>
    %138 = math.log %137 : vector<8x128xf32>
    %cst_49 = arith.constant -1.000000e+02 : f32
    %139 = vector.broadcast %cst_49 : f32 to vector<8x128xf32>
    %140 = arith.maximumf %138, %139 : vector<8x128xf32>
    %c10 = arith.constant 10 : index
    %c0_50 = arith.constant 0 : index
    %c0_51 = arith.constant 0 : index
    %141 = vector.load %arg1[%c10, %c0_50, %c0_51] : memref<32x8x128xf32, #tpu.memory_space<vmem>>, vector<1x8x128xf32>
    %142 = vector.shape_cast %141 : vector<1x8x128xf32> to vector<8x128xf32>
    %c11 = arith.constant 11 : index
    %c0_52 = arith.constant 0 : index
    %c0_53 = arith.constant 0 : index
    %143 = vector.load %arg1[%c11, %c0_52, %c0_53] : memref<32x8x128xf32, #tpu.memory_space<vmem>>, vector<1x8x128xf32>
    %144 = vector.shape_cast %143 : vector<1x8x128xf32> to vector<8x128xf32>
    %145 = arith.subf %142, %144 : vector<8x128xf32>
    %cst_54 = arith.constant 5.000000e-01 : f32
    %146 = vector.broadcast %cst_54 : f32 to vector<8x128xf32>
    %147 = arith.mulf %146, %145 : vector<8x128xf32>
    %148 = arith.addf %135, %140 : vector<8x128xf32>
    %149 = arith.subf %135, %140 : vector<8x128xf32>
    %150 = arith.mulf %147, %149 : vector<8x128xf32>
    %151 = arith.addf %148, %150 : vector<8x128xf32>
    %152 = arith.addf %123, %151 : vector<8x128xf32>
    %c2 = arith.constant 2 : index
    %c0_55 = arith.constant 0 : index
    %c0_56 = arith.constant 0 : index
    %153 = vector.load %arg1[%c2, %c0_55, %c0_56] : memref<32x8x128xf32, #tpu.memory_space<vmem>>, vector<1x8x128xf32>
    %154 = vector.shape_cast %153 : vector<1x8x128xf32> to vector<8x128xf32>
    %c3 = arith.constant 3 : index
    %c0_57 = arith.constant 0 : index
    %c0_58 = arith.constant 0 : index
    %155 = vector.load %arg1[%c3, %c0_57, %c0_58] : memref<32x8x128xf32, #tpu.memory_space<vmem>>, vector<1x8x128xf32>
    %156 = vector.shape_cast %155 : vector<1x8x128xf32> to vector<8x128xf32>
    %157 = arith.addf %154, %154 : vector<8x128xf32>
    %cst_59 = arith.constant 5.000000e-01 : f32
    %158 = vector.broadcast %cst_59 : f32 to vector<8x128xf32>
    %159 = arith.mulf %158, %156 : vector<8x128xf32>
    %cst_60 = arith.constant 0.000000e+00 : f32
    %160 = vector.broadcast %cst_60 : f32 to vector<8x128xf32>
    %161 = arith.subf %160, %159 : vector<8x128xf32>
    %162 = math.sin %157 : vector<8x128xf32>
    %163 = arith.mulf %161, %162 : vector<8x128xf32>
    %164 = math.cos %157 : vector<8x128xf32>
    %165 = arith.mulf %159, %164 : vector<8x128xf32>
    %166 = arith.mulf %163, %34 : vector<8x128xf32>
    %167 = arith.mulf %165, %35 : vector<8x128xf32>
    %168 = arith.addf %166, %167 : vector<8x128xf32>
    %cst_61 = arith.constant -5.000000e-01 : f32
    %cst_62 = arith.constant 5.000000e-01 : f32
    %169 = vector.broadcast %cst_61 : f32 to vector<8x128xf32>
    %170 = arith.maximumf %169, %168 : vector<8x128xf32>
    %171 = vector.broadcast %cst_62 : f32 to vector<8x128xf32>
    %172 = arith.minimumf %171, %170 : vector<8x128xf32>
    %cst_63 = arith.constant 5.000000e-01 : f32
    %173 = vector.broadcast %cst_63 : f32 to vector<8x128xf32>
    %174 = arith.addf %173, %172 : vector<8x128xf32>
    %175 = math.log %174 : vector<8x128xf32>
    %cst_64 = arith.constant -1.000000e+02 : f32
    %176 = vector.broadcast %cst_64 : f32 to vector<8x128xf32>
    %177 = arith.maximumf %175, %176 : vector<8x128xf32>
    %cst_65 = arith.constant 5.000000e-01 : f32
    %178 = vector.broadcast %cst_65 : f32 to vector<8x128xf32>
    %179 = arith.subf %178, %172 : vector<8x128xf32>
    %180 = math.log %179 : vector<8x128xf32>
    %cst_66 = arith.constant -1.000000e+02 : f32
    %181 = vector.broadcast %cst_66 : f32 to vector<8x128xf32>
    %182 = arith.maximumf %180, %181 : vector<8x128xf32>
    %c12 = arith.constant 12 : index
    %c0_67 = arith.constant 0 : index
    %c0_68 = arith.constant 0 : index
    %183 = vector.load %arg1[%c12, %c0_67, %c0_68] : memref<32x8x128xf32, #tpu.memory_space<vmem>>, vector<1x8x128xf32>
    %184 = vector.shape_cast %183 : vector<1x8x128xf32> to vector<8x128xf32>
    %c13 = arith.constant 13 : index
    %c0_69 = arith.constant 0 : index
    %c0_70 = arith.constant 0 : index
    %185 = vector.load %arg1[%c13, %c0_69, %c0_70] : memref<32x8x128xf32, #tpu.memory_space<vmem>>, vector<1x8x128xf32>
    %186 = vector.shape_cast %185 : vector<1x8x128xf32> to vector<8x128xf32>
    %187 = arith.subf %184, %186 : vector<8x128xf32>
    %cst_71 = arith.constant 5.000000e-01 : f32
    %188 = vector.broadcast %cst_71 : f32 to vector<8x128xf32>
    %189 = arith.mulf %188, %187 : vector<8x128xf32>
    %190 = arith.addf %177, %182 : vector<8x128xf32>
    %191 = arith.subf %177, %182 : vector<8x128xf32>
    %192 = arith.mulf %189, %191 : vector<8x128xf32>
    %193 = arith.addf %190, %192 : vector<8x128xf32>
    %194 = arith.mulf %163, %36 : vector<8x128xf32>
    %195 = arith.mulf %165, %39 : vector<8x128xf32>
    %196 = arith.addf %194, %195 : vector<8x128xf32>
    %cst_72 = arith.constant -5.000000e-01 : f32
    %cst_73 = arith.constant 5.000000e-01 : f32
    %197 = vector.broadcast %cst_72 : f32 to vector<8x128xf32>
    %198 = arith.maximumf %197, %196 : vector<8x128xf32>
    %199 = vector.broadcast %cst_73 : f32 to vector<8x128xf32>
    %200 = arith.minimumf %199, %198 : vector<8x128xf32>
    %cst_74 = arith.constant 5.000000e-01 : f32
    %201 = vector.broadcast %cst_74 : f32 to vector<8x128xf32>
    %202 = arith.addf %201, %200 : vector<8x128xf32>
    %203 = math.log %202 : vector<8x128xf32>
    %cst_75 = arith.constant -1.000000e+02 : f32
    %204 = vector.broadcast %cst_75 : f32 to vector<8x128xf32>
    %205 = arith.maximumf %203, %204 : vector<8x128xf32>
    %cst_76 = arith.constant 5.000000e-01 : f32
    %206 = vector.broadcast %cst_76 : f32 to vector<8x128xf32>
    %207 = arith.subf %206, %200 : vector<8x128xf32>
    %208 = math.log %207 : vector<8x128xf32>
    %cst_77 = arith.constant -1.000000e+02 : f32
    %209 = vector.broadcast %cst_77 : f32 to vector<8x128xf32>
    %210 = arith.maximumf %208, %209 : vector<8x128xf32>
    %c14 = arith.constant 14 : index
    %c0_78 = arith.constant 0 : index
    %c0_79 = arith.constant 0 : index
    %211 = vector.load %arg1[%c14, %c0_78, %c0_79] : memref<32x8x128xf32, #tpu.memory_space<vmem>>, vector<1x8x128xf32>
    %212 = vector.shape_cast %211 : vector<1x8x128xf32> to vector<8x128xf32>
    %c15 = arith.constant 15 : index
    %c0_80 = arith.constant 0 : index
    %c0_81 = arith.constant 0 : index
    %213 = vector.load %arg1[%c15, %c0_80, %c0_81] : memref<32x8x128xf32, #tpu.memory_space<vmem>>, vector<1x8x128xf32>
    %214 = vector.shape_cast %213 : vector<1x8x128xf32> to vector<8x128xf32>
    %215 = arith.subf %212, %214 : vector<8x128xf32>
    %cst_82 = arith.constant 5.000000e-01 : f32
    %216 = vector.broadcast %cst_82 : f32 to vector<8x128xf32>
    %217 = arith.mulf %216, %215 : vector<8x128xf32>
    %218 = arith.addf %205, %210 : vector<8x128xf32>
    %219 = arith.subf %205, %210 : vector<8x128xf32>
    %220 = arith.mulf %217, %219 : vector<8x128xf32>
    %221 = arith.addf %218, %220 : vector<8x128xf32>
    %222 = arith.addf %193, %221 : vector<8x128xf32>
    %223 = arith.mulf %163, %46 : vector<8x128xf32>
    %224 = arith.mulf %165, %53 : vector<8x128xf32>
    %225 = arith.addf %223, %224 : vector<8x128xf32>
    %cst_83 = arith.constant -5.000000e-01 : f32
    %cst_84 = arith.constant 5.000000e-01 : f32
    %226 = vector.broadcast %cst_83 : f32 to vector<8x128xf32>
    %227 = arith.maximumf %226, %225 : vector<8x128xf32>
    %228 = vector.broadcast %cst_84 : f32 to vector<8x128xf32>
    %229 = arith.minimumf %228, %227 : vector<8x128xf32>
    %cst_85 = arith.constant 5.000000e-01 : f32
    %230 = vector.broadcast %cst_85 : f32 to vector<8x128xf32>
    %231 = arith.addf %230, %229 : vector<8x128xf32>
    %232 = math.log %231 : vector<8x128xf32>
    %cst_86 = arith.constant -1.000000e+02 : f32
    %233 = vector.broadcast %cst_86 : f32 to vector<8x128xf32>
    %234 = arith.maximumf %232, %233 : vector<8x128xf32>
    %cst_87 = arith.constant 5.000000e-01 : f32
    %235 = vector.broadcast %cst_87 : f32 to vector<8x128xf32>
    %236 = arith.subf %235, %229 : vector<8x128xf32>
    %237 = math.log %236 : vector<8x128xf32>
    %cst_88 = arith.constant -1.000000e+02 : f32
    %238 = vector.broadcast %cst_88 : f32 to vector<8x128xf32>
    %239 = arith.maximumf %237, %238 : vector<8x128xf32>
    %c16 = arith.constant 16 : index
    %c0_89 = arith.constant 0 : index
    %c0_90 = arith.constant 0 : index
    %240 = vector.load %arg1[%c16, %c0_89, %c0_90] : memref<32x8x128xf32, #tpu.memory_space<vmem>>, vector<1x8x128xf32>
    %241 = vector.shape_cast %240 : vector<1x8x128xf32> to vector<8x128xf32>
    %c17 = arith.constant 17 : index
    %c0_91 = arith.constant 0 : index
    %c0_92 = arith.constant 0 : index
    %242 = vector.load %arg1[%c17, %c0_91, %c0_92] : memref<32x8x128xf32, #tpu.memory_space<vmem>>, vector<1x8x128xf32>
    %243 = vector.shape_cast %242 : vector<1x8x128xf32> to vector<8x128xf32>
    %244 = arith.subf %241, %243 : vector<8x128xf32>
    %cst_93 = arith.constant 5.000000e-01 : f32
    %245 = vector.broadcast %cst_93 : f32 to vector<8x128xf32>
    %246 = arith.mulf %245, %244 : vector<8x128xf32>
    %247 = arith.addf %234, %239 : vector<8x128xf32>
    %248 = arith.subf %234, %239 : vector<8x128xf32>
    %249 = arith.mulf %246, %248 : vector<8x128xf32>
    %250 = arith.addf %247, %249 : vector<8x128xf32>
    %251 = arith.addf %222, %250 : vector<8x128xf32>
    %c4 = arith.constant 4 : index
    %c0_94 = arith.constant 0 : index
    %c0_95 = arith.constant 0 : index
    %252 = vector.load %arg1[%c4, %c0_94, %c0_95] : memref<32x8x128xf32, #tpu.memory_space<vmem>>, vector<1x8x128xf32>
    %253 = vector.shape_cast %252 : vector<1x8x128xf32> to vector<8x128xf32>
    %c5 = arith.constant 5 : index
    %c0_96 = arith.constant 0 : index
    %c0_97 = arith.constant 0 : index
    %254 = vector.load %arg1[%c5, %c0_96, %c0_97] : memref<32x8x128xf32, #tpu.memory_space<vmem>>, vector<1x8x128xf32>
    %255 = vector.shape_cast %254 : vector<1x8x128xf32> to vector<8x128xf32>
    %256 = arith.addf %253, %253 : vector<8x128xf32>
    %cst_98 = arith.constant 5.000000e-01 : f32
    %257 = vector.broadcast %cst_98 : f32 to vector<8x128xf32>
    %258 = arith.mulf %257, %255 : vector<8x128xf32>
    %cst_99 = arith.constant 0.000000e+00 : f32
    %259 = vector.broadcast %cst_99 : f32 to vector<8x128xf32>
    %260 = arith.subf %259, %258 : vector<8x128xf32>
    %261 = math.sin %256 : vector<8x128xf32>
    %262 = arith.mulf %260, %261 : vector<8x128xf32>
    %263 = math.cos %256 : vector<8x128xf32>
    %264 = arith.mulf %258, %263 : vector<8x128xf32>
    %265 = arith.mulf %262, %34 : vector<8x128xf32>
    %266 = arith.mulf %264, %35 : vector<8x128xf32>
    %267 = arith.addf %265, %266 : vector<8x128xf32>
    %cst_100 = arith.constant -5.000000e-01 : f32
    %cst_101 = arith.constant 5.000000e-01 : f32
    %268 = vector.broadcast %cst_100 : f32 to vector<8x128xf32>
    %269 = arith.maximumf %268, %267 : vector<8x128xf32>
    %270 = vector.broadcast %cst_101 : f32 to vector<8x128xf32>
    %271 = arith.minimumf %270, %269 : vector<8x128xf32>
    %cst_102 = arith.constant 5.000000e-01 : f32
    %272 = vector.broadcast %cst_102 : f32 to vector<8x128xf32>
    %273 = arith.addf %272, %271 : vector<8x128xf32>
    %274 = math.log %273 : vector<8x128xf32>
    %cst_103 = arith.constant -1.000000e+02 : f32
    %275 = vector.broadcast %cst_103 : f32 to vector<8x128xf32>
    %276 = arith.maximumf %274, %275 : vector<8x128xf32>
    %cst_104 = arith.constant 5.000000e-01 : f32
    %277 = vector.broadcast %cst_104 : f32 to vector<8x128xf32>
    %278 = arith.subf %277, %271 : vector<8x128xf32>
    %279 = math.log %278 : vector<8x128xf32>
    %cst_105 = arith.constant -1.000000e+02 : f32
    %280 = vector.broadcast %cst_105 : f32 to vector<8x128xf32>
    %281 = arith.maximumf %279, %280 : vector<8x128xf32>
    %c18 = arith.constant 18 : index
    %c0_106 = arith.constant 0 : index
    %c0_107 = arith.constant 0 : index
    %282 = vector.load %arg1[%c18, %c0_106, %c0_107] : memref<32x8x128xf32, #tpu.memory_space<vmem>>, vector<1x8x128xf32>
    %283 = vector.shape_cast %282 : vector<1x8x128xf32> to vector<8x128xf32>
    %c19 = arith.constant 19 : index
    %c0_108 = arith.constant 0 : index
    %c0_109 = arith.constant 0 : index
    %284 = vector.load %arg1[%c19, %c0_108, %c0_109] : memref<32x8x128xf32, #tpu.memory_space<vmem>>, vector<1x8x128xf32>
    %285 = vector.shape_cast %284 : vector<1x8x128xf32> to vector<8x128xf32>
    %286 = arith.subf %283, %285 : vector<8x128xf32>
    %cst_110 = arith.constant 5.000000e-01 : f32
    %287 = vector.broadcast %cst_110 : f32 to vector<8x128xf32>
    %288 = arith.mulf %287, %286 : vector<8x128xf32>
    %289 = arith.addf %276, %281 : vector<8x128xf32>
    %290 = arith.subf %276, %281 : vector<8x128xf32>
    %291 = arith.mulf %288, %290 : vector<8x128xf32>
    %292 = arith.addf %289, %291 : vector<8x128xf32>
    %293 = arith.mulf %262, %36 : vector<8x128xf32>
    %294 = arith.mulf %264, %39 : vector<8x128xf32>
    %295 = arith.addf %293, %294 : vector<8x128xf32>
    %cst_111 = arith.constant -5.000000e-01 : f32
    %cst_112 = arith.constant 5.000000e-01 : f32
    %296 = vector.broadcast %cst_111 : f32 to vector<8x128xf32>
    %297 = arith.maximumf %296, %295 : vector<8x128xf32>
    %298 = vector.broadcast %cst_112 : f32 to vector<8x128xf32>
    %299 = arith.minimumf %298, %297 : vector<8x128xf32>
    %cst_113 = arith.constant 5.000000e-01 : f32
    %300 = vector.broadcast %cst_113 : f32 to vector<8x128xf32>
    %301 = arith.addf %300, %299 : vector<8x128xf32>
    %302 = math.log %301 : vector<8x128xf32>
    %cst_114 = arith.constant -1.000000e+02 : f32
    %303 = vector.broadcast %cst_114 : f32 to vector<8x128xf32>
    %304 = arith.maximumf %302, %303 : vector<8x128xf32>
    %cst_115 = arith.constant 5.000000e-01 : f32
    %305 = vector.broadcast %cst_115 : f32 to vector<8x128xf32>
    %306 = arith.subf %305, %299 : vector<8x128xf32>
    %307 = math.log %306 : vector<8x128xf32>
    %cst_116 = arith.constant -1.000000e+02 : f32
    %308 = vector.broadcast %cst_116 : f32 to vector<8x128xf32>
    %309 = arith.maximumf %307, %308 : vector<8x128xf32>
    %c20 = arith.constant 20 : index
    %c0_117 = arith.constant 0 : index
    %c0_118 = arith.constant 0 : index
    %310 = vector.load %arg1[%c20, %c0_117, %c0_118] : memref<32x8x128xf32, #tpu.memory_space<vmem>>, vector<1x8x128xf32>
    %311 = vector.shape_cast %310 : vector<1x8x128xf32> to vector<8x128xf32>
    %c21 = arith.constant 21 : index
    %c0_119 = arith.constant 0 : index
    %c0_120 = arith.constant 0 : index
    %312 = vector.load %arg1[%c21, %c0_119, %c0_120] : memref<32x8x128xf32, #tpu.memory_space<vmem>>, vector<1x8x128xf32>
    %313 = vector.shape_cast %312 : vector<1x8x128xf32> to vector<8x128xf32>
    %314 = arith.subf %311, %313 : vector<8x128xf32>
    %cst_121 = arith.constant 5.000000e-01 : f32
    %315 = vector.broadcast %cst_121 : f32 to vector<8x128xf32>
    %316 = arith.mulf %315, %314 : vector<8x128xf32>
    %317 = arith.addf %304, %309 : vector<8x128xf32>
    %318 = arith.subf %304, %309 : vector<8x128xf32>
    %319 = arith.mulf %316, %318 : vector<8x128xf32>
    %320 = arith.addf %317, %319 : vector<8x128xf32>
    %321 = arith.addf %292, %320 : vector<8x128xf32>
    %322 = arith.mulf %262, %46 : vector<8x128xf32>
    %323 = arith.mulf %264, %53 : vector<8x128xf32>
    %324 = arith.addf %322, %323 : vector<8x128xf32>
    %cst_122 = arith.constant -5.000000e-01 : f32
    %cst_123 = arith.constant 5.000000e-01 : f32
    %325 = vector.broadcast %cst_122 : f32 to vector<8x128xf32>
    %326 = arith.maximumf %325, %324 : vector<8x128xf32>
    %327 = vector.broadcast %cst_123 : f32 to vector<8x128xf32>
    %328 = arith.minimumf %327, %326 : vector<8x128xf32>
    %cst_124 = arith.constant 5.000000e-01 : f32
    %329 = vector.broadcast %cst_124 : f32 to vector<8x128xf32>
    %330 = arith.addf %329, %328 : vector<8x128xf32>
    %331 = math.log %330 : vector<8x128xf32>
    %cst_125 = arith.constant -1.000000e+02 : f32
    %332 = vector.broadcast %cst_125 : f32 to vector<8x128xf32>
    %333 = arith.maximumf %331, %332 : vector<8x128xf32>
    %cst_126 = arith.constant 5.000000e-01 : f32
    %334 = vector.broadcast %cst_126 : f32 to vector<8x128xf32>
    %335 = arith.subf %334, %328 : vector<8x128xf32>
    %336 = math.log %335 : vector<8x128xf32>
    %cst_127 = arith.constant -1.000000e+02 : f32
    %337 = vector.broadcast %cst_127 : f32 to vector<8x128xf32>
    %338 = arith.maximumf %336, %337 : vector<8x128xf32>
    %c22 = arith.constant 22 : index
    %c0_128 = arith.constant 0 : index
    %c0_129 = arith.constant 0 : index
    %339 = vector.load %arg1[%c22, %c0_128, %c0_129] : memref<32x8x128xf32, #tpu.memory_space<vmem>>, vector<1x8x128xf32>
    %340 = vector.shape_cast %339 : vector<1x8x128xf32> to vector<8x128xf32>
    %c23 = arith.constant 23 : index
    %c0_130 = arith.constant 0 : index
    %c0_131 = arith.constant 0 : index
    %341 = vector.load %arg1[%c23, %c0_130, %c0_131] : memref<32x8x128xf32, #tpu.memory_space<vmem>>, vector<1x8x128xf32>
    %342 = vector.shape_cast %341 : vector<1x8x128xf32> to vector<8x128xf32>
    %343 = arith.subf %340, %342 : vector<8x128xf32>
    %cst_132 = arith.constant 5.000000e-01 : f32
    %344 = vector.broadcast %cst_132 : f32 to vector<8x128xf32>
    %345 = arith.mulf %344, %343 : vector<8x128xf32>
    %346 = arith.addf %333, %338 : vector<8x128xf32>
    %347 = arith.subf %333, %338 : vector<8x128xf32>
    %348 = arith.mulf %345, %347 : vector<8x128xf32>
    %349 = arith.addf %346, %348 : vector<8x128xf32>
    %350 = arith.addf %321, %349 : vector<8x128xf32>
    %351 = arith.addf %152, %251 : vector<8x128xf32>
    %352 = arith.addf %351, %350 : vector<8x128xf32>
    %cst_133 = arith.constant 0.000000e+00 : f32
    %353 = vector.broadcast %cst_133 : f32 to vector<8x128xf32>
    %354 = arith.subf %353, %352 : vector<8x128xf32>
    %355 = tpu.iota {dimensions = array<i32: 0>} : vector<8x128xi32>
    %356 = tpu.iota {dimensions = array<i32: 1>} : vector<8x128xi32>
    %c8_i32 = arith.constant 8 : i32
    %357 = arith.muli %arg0, %c8_i32 : i32
    %358 = vector.broadcast %357 : i32 to vector<8x128xi32>
    %359 = arith.addi %358, %355 : vector<8x128xi32>
    %c128_i32 = arith.constant 128 : i32
    %360 = vector.broadcast %c128_i32 : i32 to vector<8x128xi32>
    %361 = arith.muli %359, %360 : vector<8x128xi32>
    %362 = arith.addi %361, %356 : vector<8x128xi32>
    %c6_i32 = arith.constant 6 : i32
    %363 = vector.broadcast %c6_i32 : i32 to vector<8x128xi32>
    %364 = arith.cmpi slt, %362, %363 : vector<8x128xi32>
    %cst_134 = arith.constant 0.000000e+00 : f32
    %365 = vector.broadcast %cst_134 : f32 to vector<8x128xf32>
    %366 = arith.select %364, %354, %365 : vector<8x128xi1>, vector<8x128xf32>
    %c0_135 = arith.constant 0 : index
    %c0_136 = arith.constant 0 : index
    %367 = vector.load %arg2[%c0_135, %c0_136] : memref<8x128xf32, #tpu.memory_space<vmem>>, vector<8x128xf32>
    tpu.vector_store %arg2[%c0_135, %c0_136], %366 {strides = array<i32>} : memref<8x128xf32, #tpu.memory_space<vmem>>, vector<8x128xf32>,
    return
  }
  func.func @transform_0(%arg0: i32) -> (i32, i32, i32) {
    %c0_i32 = arith.constant 0 : i32
    %c0_i32_0 = arith.constant 0 : i32
    %c0_i32_1 = arith.constant 0 : i32
    return %c0_i32, %arg0, %c0_i32_0 : i32, i32, i32
  }
  func.func @transform_1(%arg0: i32) -> (i32, i32) {
    %c0_i32 = arith.constant 0 : i32
    %c0_i32_0 = arith.constant 0 : i32
    return %arg0, %c0_i32 : i32, i32
  }
}

</mosaic_0001>

<bundles_post_ra>
// kernel: tpu_custom_call.1
= control target key start
LH: loop header
LB: loop body
LE: loop exit
PB: predicated region body
PF: predicated region fallthrough
CT: control target
= control target key end

     0   :  { %6 = vsyncpa [#allocation3], 0  ;;  %s1497_s0 = inlined_call_operand.hbm [shape: f32[32,8,128], index: 0, kind: input, shape index: {}]   ;;  %s1498_s1 = inlined_call_operand.hbm [shape: f32[8,128], index: 1, kind: output, shape index: {}]  }
   0x1   :  { %7 = vsyncpa [#allocation4], 0  ;;  %s1117_s6 = smov [#allocation2]   ;;  %s1069_s10 = scalar_lea.hbm %s1497_s0, 4096 }
   0x2   :  { %s13_s7 = sshll.u32 %s1117_s6, 4  ;;  %p1070_p0 = scmp.ne.s32.totalorder %s1497_s0, %s1069_s10  ;;  %s14_s7 = int_to_ptr.vmem [resolvable:$true] %s13_s7 }
   0x3   :  { %p1073_p1 = scmp.lt.u32.totalorder %s1069_s10, %s1497_s0 }
   0x5   :  { %p1075_p2 = pnand %p1073_p1, %p1070_p0 }
   0x7   :  { %1078 = shalt.err (!%p1075_p2)
}
   0x8   :  { %s1079_s15 = scalar_lea.vmem %s14_s7, 4096  ;;  %p1084_p4 = scmp.lt.s32.totalorder %s14_s7, %s14_s7 }
   0x9   :  { %p1080_p3 = scmp.ne.s32.totalorder %s14_s7, %s1079_s15  ;;  %p1085_p5 = scmp.lt.s32.totalorder %s1079_s15, %s1079_s15 }
   0xb   :  { %p1086_p6 = por %p1085_p5, %p1084_p4 }
   0xd   :  { %p1087_p7 = pnand %p1086_p6, %p1080_p3 }
   0xf   :  { %1090 = shalt.err (!%p1087_p7)
}
  0x10   :  { %s1118_s16 = smov 128   ;;  %s1119_s17 = smov 8  }
  0x11   :  { %19 = dma.hbm_to_vmem [thread:$0]  %s1497_s0, 4096, %s14_s7, [#allocation3], %s1118_s16, %s1118_s16, %s1119_s17  }
  0x12   :  { %1113 = dma.done.wait [#allocation3], 4096  }
  0x13   :  { %1114 = vsyncadd [#allocation3], 4294963200  ;;  %v76_v0 = vld [vmem:[#allocation2] sm:$0xff]  ;;  %v363_v3 = vld [vmem:[#allocation2 + $0x10] sm:$0xff]  ;;  %v1120_v26 = vmov 683565275  }
  0x14   :  { %v1149_v1 = vadd.f32 %v76_v0, %v76_v0  ;;  %v1153_v6 = vadd.f32 %v363_v3, %v363_v3  ;;  %v650_v7 = vld [vmem:[#allocation2 + $0x20] sm:$0xff]  ;;  %v1121_v28 = vmov 2475754826   ;;  %v1122_v30 = vmov 2131351028   ;;  %s1126_s0 = smov [#allocation5]  }
  0x15   :  { %v1159_v12 = vadd.f32 %v650_v7, %v650_v7  ;;  %v1123_v32 = vmov 2102212464   ;;  %v1124_v34 = vmov 920167782   ;;  %v1125_v42 = vmov 1326507024  }
  0x16   :  { %v82_v2 = vand.u32 2147483647, %v1149_v1  ;;  %v85_v4 = vand.u32 2139095040, %v1149_v1  ;;  %v369_v10 = vand.u32 2147483647, %v1153_v6  ;;  %v372_v11 = vand.u32 2139095040, %v1153_v6 }
  0x17   :  { %v659_v19 = vand.u32 2139095040, %v1159_v12  ;;  %vm84_vm14 = vcmp.lt.s32.totalorder %v1149_v1, 0  ;;  %s957_s20 = sshll.u32 %s1126_s0, 4  ;;  %s958_s20 = int_to_ptr.vmem [resolvable:$true] %s957_s20 }
  0x18   :  { %v86_v5 = vshrl.u32 %v85_v4, 23  ;;  %v89_v8 = vand.u32 8388607, %v82_v2  ;;  %v373_v15 = vshrl.u32 %v372_v11, 23  ;;  %v376_v16 = vand.u32 8388607, %v369_v10  ;;  %p1096_p9 = scmp.lt.s32.totalorder %s958_s20, %s958_s20 }
  0x19   :  { %v660_v36 = vshrl.u32 %v659_v19, 23  ;;  %s1091_s21 = scalar_lea.vmem %s958_s20, 128 }
  0x1a   :  { %v966_v9 = vadd.s32 4294967169, %v86_v5  ;;  %v90_v14 = vor.u32 8388608, %v89_v8  ;;  %v977_v18 = vadd.s32 4294967169, %v373_v15  ;;  %v377_v23 = vor.u32 8388608, %v376_v16  ;;  %p1092_p8 = scmp.ne.s32.totalorder %s958_s20, %s1091_s21  ;;  %p1097_p10 = scmp.lt.s32.totalorder %s1091_s21, %s1091_s21 }
  0x1b   :  { %v988_v3 = vadd.s32 4294967169, %v660_v36 }
  0x1c   :  { %v92_v13 = vadd.s32 1, %v966_v9  ;;  %v1164_v22 = vshll.u32 %v90_v14, 8  ;;  %v379_v24 = vadd.s32 1, %v977_v18  ;;  %v1180_v57 = vshll.u32 %v377_v23, 8  ;;  %p1098_p11 = por %p1097_p10, %p1096_p9 }
  0x1e   :  { %vm93_vm0 = vcmp.gt.s32.totalorder %v92_v13, 0  ;;  %vm380_vm4 = vcmp.gt.s32.totalorder %v379_v24, 0  ;;  %p1099_p12 = pnand %p1098_p11, %p1092_p8 }
  0x1f   :  { %v94_v17 = vsel %vm93_vm0, %v92_v13, 0  ;;  %v381_v49 = vsel %vm380_vm4, %v379_v24, 0  ;;  %vm1257_vm0 = vcmp.le.f32.partialorder %v82_v2, 0.7853982 }
  0x20   :  { %v95_v20 = vshrl.u32 %v94_v17, 5  ;;  %v96_v21 = vand.u32 31, %v94_v17  ;;  %v382_v60 = vshrl.u32 %v381_v49, 5  ;;  %v383_v61 = vand.u32 31, %v381_v49 }
  0x22   :  { %v97_v25 = vsub.s32 32, %v96_v21  ;;  %v99_v27 = vshll.u32 %v1120_v26, %v96_v21  ;;  %v102_v29 = vshll.u32 %v1121_v28, %v96_v21  ;;  %v105_v31 = vshll.u32 %v1122_v30, %v96_v21 }
  0x23   :  { %v108_v33 = vshll.u32 %v1123_v32, %v96_v21  ;;  %v111_v35 = vshll.u32 %v1124_v34, %v96_v21  ;;  %vm114_vm1 = vcmp.lt.s32.totalorder %v95_v20, 1  ;;  %vm115_vm2 = vcmp.lt.s32.totalorder %v95_v20, 2 }
  0x24   :  { %v98_v37 = vshrl.u32 %v1120_v26, %v97_v25  ;;  %v100_v38 = vshrl.u32 %v1121_v28, %v97_v25  ;;  %v103_v39 = vshrl.u32 %v1122_v30, %v97_v25  ;;  %v106_v40 = vshrl.u32 %v1123_v32, %v97_v25 }
  0x25   :  { %v109_v41 = vshrl.u32 %v1124_v34, %v97_v25  ;;  %v112_v43 = vshrl.u32 %v1125_v42, %v97_v25  ;;  %vm117_vm3 = vcmp.lt.s32.totalorder %v95_v20, 4  ;;  %vm116_vm5 = vcmp.lt.s32.totalorder %v95_v20, 3 }
  0x26   :  { %v101_v44 = vor.u32 %v100_v38, %v99_v27  ;;  %v104_v45 = vor.u32 %v103_v39, %v102_v29  ;;  %v107_v46 = vor.u32 %v106_v40, %v105_v31  ;;  %v384_v9 = vsub.s32 32, %v383_v61 }
  0x27   :  { %v110_v47 = vor.u32 %v109_v41, %v108_v33  ;;  %v113_v48 = vor.u32 %v112_v43, %v111_v35  ;;  %v386_v11 = vshll.u32 %v1120_v26, %v383_v61  ;;  %v389_v13 = vshll.u32 %v1121_v28, %v383_v61 }
  0x28   :  { %v118_v50 = vsel %vm114_vm1, %v98_v37, %v101_v44  ;;  %v119_v51 = vsel %vm117_vm3, %v107_v46, 2102212464  ;;  %v122_v52 = vsel %vm114_vm1, %v101_v44, %v104_v45  ;;  %v126_v53 = vsel %vm114_vm1, %v104_v45, %v107_v46 }
  0x29   :  { %v120_v54 = vsel %vm116_vm5, %v104_v45, %v119_v51  ;;  %v123_v55 = vsel %vm117_vm3, %v110_v47, 920167782  ;;  %v127_v56 = vsel %vm117_vm3, %v113_v48, 1326507024  ;;  %v392_v14 = vshll.u32 %v1122_v30, %v383_v61 }
  0x2a   :  { %v124_v58 = vsel %vm116_vm5, %v107_v46, %v123_v55  ;;  %v128_v59 = vsel %vm116_vm5, %v110_v47, %v127_v56  ;;  %v121_v62 = vsel %vm115_vm2, %v118_v50, %v120_v54  ;;  %v395_v16 = vshll.u32 %v1123_v32, %v383_v61 }
  0x2b   :  { %v125_v63 = vsel %vm115_vm2, %v122_v52, %v124_v58  ;;  %v129_v0 = vsel %vm115_vm2, %v126_v53, %v128_v59  ;;  %v137_v15 = vmul.u32 %v1164_v22, %v121_v62  ;;  %v398_v17 = vshll.u32 %v1124_v34, %v383_v61 }
  0x2c   :  { %v1186_v4 = vmul.u32.u64.low %v1164_v22, %v129_v0  ;;  %v1187_v5 = vmul.u32.u64.high %v1164_v22, %v129_v0, %v1186_v4  ;;  %v1190_v7 = vmul.u32.u64.low %v1164_v22, %v125_v63  ;;  %v1191_v8 = vmul.u32.u64.high %v1164_v22, %v125_v63, %v1190_v7 }
  0x2d   :  { %vm401_vm6 = vcmp.lt.s32.totalorder %v382_v60, 1  ;;  %v385_v18 = vshrl.u32 %v1120_v26, %v384_v9  ;;  %v387_v19 = vshrl.u32 %v1121_v28, %v384_v9  ;;  %v390_v20 = vshrl.u32 %v1122_v30, %v384_v9 }
  0x2e   :  { %v393_v21 = vshrl.u32 %v1123_v32, %v384_v9  ;;  %vm139_vm7 = vc.u32 %v1187_v5, %v1190_v7  ;;  %v140_v23 = vadd.s32 1, %v1191_v8  ;;  %v396_v22 = vshrl.u32 %v1124_v34, %v384_v9 }
  0x2f   :  { %vm402_vm8 = vcmp.lt.s32.totalorder %v382_v60, 2  ;;  %v388_v24 = vor.u32 %v387_v19, %v386_v11  ;;  %v391_v25 = vor.u32 %v390_v20, %v389_v13  ;;  %v399_v29 = vshrl.u32 %v1125_v42, %v384_v9 }
  0x30   :  { %v394_v27 = vor.u32 %v393_v21, %v392_v14  ;;  %v141_v31 = vsel %vm139_vm7, %v140_v23, %v1191_v8  ;;  %v397_v33 = vor.u32 %v396_v22, %v395_v16  ;;  %vm403_vm9 = vcmp.lt.s32.totalorder %v382_v60, 3 }
  0x31   :  { %vm404_vm10 = vcmp.lt.s32.totalorder %v382_v60, 4  ;;  %v142_v35 = vadd.s32 %v141_v31, %v137_v15  ;;  %v400_v36 = vor.u32 %v399_v29, %v398_v17  ;;  %v405_v37 = vsel %vm401_vm6, %v385_v18, %v388_v24 }
  0x32   :  { %v406_v38 = vsel %vm404_vm10, %v394_v27, 2102212464  ;;  %v409_v40 = vsel %vm401_vm6, %v388_v24, %v391_v25  ;;  %v410_v41 = vsel %vm404_vm10, %v397_v33, 920167782  ;;  %v413_v43 = vsel %vm401_vm6, %v391_v25, %v394_v27 }
  0x33   :  { %v407_v39 = vsel %vm403_vm9, %v391_v25, %v406_v38  ;;  %v143_v44 = vadd.s32 536870912, %v142_v35  ;;  %v411_v45 = vsel %vm403_vm9, %v394_v27, %v410_v41  ;;  %v414_v46 = vsel %vm404_vm10, %v400_v36, 1326507024 }
  0x34   :  { %v408_v47 = vsel %vm402_vm8, %v405_v37, %v407_v39  ;;  %v412_v48 = vsel %vm402_vm8, %v409_v40, %v411_v45  ;;  %v415_v49 = vsel %vm403_vm9, %v397_v33, %v414_v46  ;;  %v666_v50 = vadd.s32 1, %v988_v3 }
  0x35   :  { %v1215_v51 = vshrl.u32 %v143_v44, 30  ;;  %v416_v52 = vsel %vm402_vm8, %v413_v43, %v415_v49  ;;  %v1219_v53 = vmul.u32.u64.low %v1180_v57, %v412_v48  ;;  %v1220_v54 = vmul.u32.u64.high %v1180_v57, %v412_v48, %v1219_v53 }
  0x36   :  { %v1224_v55 = vmul.u32.u64.low %v1180_v57, %v416_v52  ;;  %v1225_v56 = vmul.u32.u64.high %v1180_v57, %v416_v52, %v1224_v55  ;;  %vm667_vm11 = vcmp.gt.s32.totalorder %v666_v50, 0  ;;  %v424_v61 = vmul.u32 %v1180_v57, %v408_v47 }
  0x37   :  { %v145_v58 = vshll.u32 %v1215_v51, 30  ;;  %v668_v59 = vsel %vm667_vm11, %v666_v50, 0  ;;  %v427_v63 = vadd.s32 1, %v1220_v54  ;;  %v656_v8 = vand.u32 2147483647, %v1159_v12 }
  0x38   :  { %vm426_vm12 = vc.u32 %v1225_v56, %v1219_v53  ;;  %v670_v60 = vand.u32 31, %v668_v59  ;;  %v138_v16 = vadd.s32 %v1190_v7, %v1187_v5  ;;  %v1240_v18 = vshrl.u32 %v668_v59, 5 }
  0x39   :  { %v146_v62 = vsub.s32 %v142_v35, %v145_v58  ;;  %v428_v3 = vsel %vm426_vm12, %v427_v63, %v1220_v54  ;;  %v663_v57 = vand.u32 8388607, %v656_v8  ;;  %vm371_vm6 = vcmp.lt.s32.totalorder %v1153_v6, 0 }
  0x3a   :  { %v429_v4 = vadd.s32 %v428_v3, %v424_v61  ;;  %v671_v13 = vsub.s32 32, %v670_v60  ;;  %v673_v19 = vshll.u32 %v1120_v26, %v670_v60  ;;  %v676_v23 = vshll.u32 %v1121_v28, %v670_v60 }
  0x3b   :  { %v148_v0 = vsub.s32 0, %v146_v62  ;;  %v679_v24 = vshll.u32 %v1122_v30, %v670_v60  ;;  %v682_v5 = vshll.u32 %v1123_v32, %v670_v60  ;;  %v685_v31 = vshll.u32 %v1124_v34, %v670_v60 }
  0x3c   :  { %v430_v11 = vadd.s32 536870912, %v429_v4  ;;  %v674_v21 = vshrl.u32 %v1121_v28, %v671_v13  ;;  %v677_v22 = vshrl.u32 %v1122_v30, %v671_v13  ;;  %v680_v25 = vshrl.u32 %v1123_v32, %v671_v13 }
  0x3d   :  { %v967_v9 = vmin.u32 %v148_v0, %v146_v62  ;;  %v683_v29 = vshrl.u32 %v1124_v34, %v671_v13  ;;  %v686_v28 = vshrl.u32 %v1125_v42, %v671_v13  ;;  %v664_v38 = vor.u32 8388608, %v663_v57 }
  0x3e   :  { %v1234_v15 = vshrl.u32 %v430_v11, 30  ;;  %v675_v30 = vor.u32 %v674_v21, %v673_v19  ;;  %v678_v41 = vor.u32 %v677_v22, %v676_v23  ;;  %v681_v43 = vor.u32 %v680_v25, %v679_v24 }
  0x3f   :  { %v150_v14 = vclz %v967_v9  ;;  %v684_v44 = vor.u32 %v683_v29, %v682_v5  ;;  %vm688_vm15 = vcmp.lt.s32.totalorder %v1240_v18, 1  ;;  %v687_v46 = vor.u32 %v686_v28, %v685_v31 }
  0x40   :  { %v432_v20 = vshll.u32 %v1234_v15, 30  ;;  %vm691_vm1 = vcmp.lt.s32.totalorder %v1240_v18, 4  ;;  %v672_v48 = vshrl.u32 %v1120_v26, %v671_v13  ;;  %vm690_vm2 = vcmp.lt.s32.totalorder %v1240_v18, 3 }
  0x41   :  { %v968_v17 = vadd.s32 4294967294, %v150_v14  ;;  %v704_v49 = vshll.u32 %v664_v38, 8  ;;  %vm689_vm3 = vcmp.lt.s32.totalorder %v1240_v18, 2  ;;  %v693_v2 = vsel %vm691_vm1, %v681_v43, 2102212464 }
  0x42   :  { %v433_v27 = vsub.s32 %v429_v4, %v432_v20  ;;  %v696_v55 = vsel %vm688_vm15, %v675_v30, %v678_v41  ;;  %v697_v58 = vsel %vm691_vm1, %v684_v44, 920167782  ;;  %v700_v26 = vsel %vm688_vm15, %v678_v41, %v681_v43 }
  0x43   :  { %vm969_vm13 = vcmp.lt.s32.totalorder %v968_v17, 0  ;;  %v425_v61 = vadd.s32 %v1219_v53, %v1225_v56  ;;  %v701_v63 = vsel %vm691_vm1, %v687_v46, 1326507024  ;;  %v692_v60 = vsel %vm688_vm15, %v672_v48, %v675_v30  ;;  %v24_v30 = vld [vmem:[#allocation2 + $0xc0] sm:$0xff] }
  0x44   :  { %v153_v7 = vsel %vm969_vm13, 0, %v968_v17  ;;  %v435_v37 = vsub.s32 0, %v433_v27  ;;  %v694_v0 = vsel %vm690_vm2, %v678_v41, %v693_v2  ;;  %v702_v3 = vsel %vm690_vm2, %v684_v44, %v701_v63  ;;  %v1314_v41 = vld [vmem:[#allocation2 + $0xc8] sm:$0xff] }
  0x45   :  { %v154_v33 = vsub.s32 32, %v153_v7  ;;  %v155_v35 = vshll.u32 %v146_v62, %v153_v7  ;;  %v158_v36 = vsub.s32 4294967266, %v153_v7  ;;  %v698_v62 = vsel %vm690_vm2, %v681_v43, %v697_v58  ;;  %v1317_v43 = vld [vmem:[#allocation2 + $0xe0] sm:$0xff]  ;;  %v1319_v44 = vld [vmem:[#allocation2 + $0xe8] sm:$0xff]  ;;  %v1338_v58 = vld [vmem:[#allocation2 + $0xd8] sm:$0xff] }
  0x46   :  { %v978_v32 = vmin.u32 %v435_v37, %v433_v27  ;;  %v699_v53 = vsel %vm689_vm3, %v696_v55, %v698_v62  ;;  %v703_v56 = vsel %vm689_vm3, %v700_v26, %v702_v3  ;;  %v168_v11 = vsub.s32 4, %v1215_v51  ;;  %v1340_v26 = vld [vmem:[#allocation2 + $0xf8] sm:$0xff] }
  0x47   :  { %v156_v39 = vshrl.u32 %v138_v16, %v154_v33  ;;  %v159_v40 = vadd.s32 127, %v158_v36  ;;  %v695_v17 = vsel %vm689_vm3, %v692_v60, %v694_v0  ;;  %v455_v38 = vsub.s32 4, %v1234_v15 }
  0x48   :  { %v437_v47 = vclz %v978_v32  ;;  %v1292_v19 = vmul.u32.u64.low %v704_v49, %v703_v56  ;;  %v1293_v20 = vmul.u32.u64.high %v704_v49, %v703_v56, %v1292_v19  ;;  %v169_v18 = vsel %vm84_vm14, %v168_v11, %v1215_v51  ;;  %v28_v51 = vld [vmem:[#allocation2 + $0xd0] sm:$0xff] }
  0x49   :  { %v157_v42 = vor.u32 %v156_v39, %v155_v35  ;;  %v160_v45 = vshll.u32 %v159_v40, 23  ;;  %v1295_v22 = vmul.u32.u64.low %v704_v49, %v699_v53  ;;  %v1296_v24 = vmul.u32.u64.high %v704_v49, %v699_v53, %v1295_v22 }
  0x4a   :  { %v979_v54 = vadd.s32 4294967294, %v437_v47  ;;  %v711_v29 = vmul.u32 %v704_v49, %v695_v17  ;;  %v171_v37 = vsel %vm1257_vm0, 0, %v169_v18  ;;  %vm1323_vm7 = vcmp.le.f32.partialorder %v369_v10, 0.7853982 }
  0x4b   :  { %v161_v50 = vor.u32 4788187, %v160_v45  ;;  %v164_v52 = vcvt.s32.f32 %v157_v42  ;;  %vm713_vm5 = vc.u32 %v1293_v20, %v1295_v22  ;;  %v714_v35 = vadd.s32 1, %v1296_v24 }
  0x4c   :  { %vm980_vm4 = vcmp.lt.s32.totalorder %v979_v54, 0  ;;  %v175_v42 = vadd.s32 3, %v171_v37  ;;  %v39_v46 = vmul.f32 %v1314_v41, %v24_v30  ;;  %v45_v47 = vmul.f32 %v28_v51, %v1314_v41 }
  0x4d   :  { %v162_v59 = vand.u32 2147483647, %v161_v50  ;;  %v440_v9 = vsel %vm980_vm4, 0, %v979_v54  ;;  %v715_v28 = vsel %vm713_vm5, %v714_v35, %v1296_v24  ;;  %v456_v48 = vsel %vm371_vm6, %v455_v38, %v1234_v15  ;;  %v36_v50 = vld [vmem:[#allocation2 + $0xf0] sm:$0xff] }
  0x4e   :  { %v441_v13 = vsub.s32 32, %v440_v9  ;;  %v442_v14 = vshll.u32 %v433_v27, %v440_v9  ;;  %v445_v57 = vsub.s32 4294967266, %v440_v9  ;;  %v716_v39 = vadd.s32 %v715_v28, %v711_v29 }
  0x4f   :  { %v165_v4 = vmul.f32 %v164_v52, %v162_v59  ;;  %v40_v52 = vmul.f32 %v1319_v44, %v1317_v43  ;;  %v1334_v2 = vmul.f32 %v28_v51, %v24_v30  ;;  %v1336_v54 = vmul.f32 %v24_v30, %v24_v30 }
  0x50   :  { %v443_v21 = vshrl.u32 %v425_v61, %v441_v13  ;;  %v446_v23 = vadd.s32 127, %v445_v57  ;;  %v717_v32 = vadd.s32 536870912, %v716_v39  ;;  %v42_v59 = vmul.f32 %v1319_v44, %v24_v30  ;;  %v78_v57 = vld [vmem:[#allocation2 + $0x8] sm:$0xff] }
  0x51   :  { %v166_v16 = vxor.u32 2147483648, %v165_v4  ;;  %v43_v15 = vmul.f32 %v1317_v43, %v1314_v41  ;;  %v1350_v60 = vmul.f32 %v1319_v44, %v28_v51  ;;  %v176_v0 = vand.u32 3, %v175_v42 }
  0x52   :  { %v444_v7 = vor.u32 %v443_v21, %v442_v14  ;;  %v447_v27 = vshll.u32 %v446_v23, 23  ;;  %v1330_v49 = vshrl.u32 %v717_v32, 30  ;;  %v458_v3 = vsel %vm1323_vm7, 0, %v456_v48 }
  0x53   :  { %v167_v25 = vsel %vm84_vm14, %v166_v16, %v165_v4  ;;  %v46_v4 = vmul.f32 %v36_v50, %v1319_v44  ;;  %v280_v9 = vand.u32 3, %v171_v37  ;;  %v41_v56 = vadd.f32 %v40_v52, %v39_v46 }
  0x54   :  { %v170_v5 = vsel %vm1257_vm0, %v1149_v1, %v167_v25  ;;  %v448_v31 = vor.u32 4788187, %v447_v27  ;;  %v451_v33 = vcvt.s32.f32 %v444_v7  ;;  %v719_v62 = vshll.u32 %v1330_v49, 30 }
  0x55   :  { %1021 = vcosq.f32 %v170_v5  ;;  %v1358_v11 = vmul.f32 %v36_v50, %v1314_v41  ;;  %v51_v13 = vmul.f32 %v1338_v58, %v24_v30  ;;  %v52_v14 = vmul.f32 %v1340_v26, %v1317_v43 }
  0x56   :  { %1023 = vsinq.f32 %v170_v5  ;;  %v449_v36 = vand.u32 2147483647, %v448_v31  ;;  %v1355_v53 = vsub.s32 %v716_v39, %v719_v62  ;;  %v462_v19 = vadd.s32 3, %v458_v3 }
  0x57   :  { %v44_v23 = vsub.f32 %v42_v59, %v43_v15  ;;  %v1366_v24 = vmul.f32 %v1317_v43, %v1338_v58  ;;  %vm178_vm8 = vcmp.eq.s32.totalorder %v176_v0, 0  ;;  %vm181_vm9 = vcmp.eq.s32.totalorder %v176_v0, 2 }
  0x58   :  { %v452_v40 = vmul.f32 %v451_v33, %v449_v36  ;;  %v722_v21 = vsub.s32 0, %v1355_v53  ;;  %v1369_v25 = vmul.f32 %v1340_v26, %v24_v30  ;;  %vm282_vm10 = vcmp.eq.s32.totalorder %v280_v9, 0 }
  0x59   :  { %vm285_vm11 = vcmp.eq.s32.totalorder %v280_v9, 2  ;;  %v47_v7 = vadd.f32 %v46_v4, %v45_v47  ;;  %v80_v27 = vmul.f32 0.5, %v78_v57  ;;  %vm177_vm12 = vcmp.lt.s32.totalorder %v176_v0, 2  ;;  %v365_v47 = vld [vmem:[#allocation2 + $0x18] sm:$0xff] }
  0x5a   :  { %v453_v45 = vxor.u32 2147483648, %v452_v40  ;;  %v989_v5 = vmin.u32 %v722_v21, %v1355_v53  ;;  %v567_v18 = vand.u32 3, %v458_v3  ;;  %v463_v33 = vand.u32 3, %v462_v19 }
  0x5b   :  { %v50_v36 = vsub.f32 %v1350_v60, %v1358_v11  ;;  %vm281_vm13 = vcmp.lt.s32.totalorder %v280_v9, 2  ;;  %v53_v38 = vadd.f32 %v52_v14, %v51_v13  ;;  %v56_v39 = vsub.f32 %v1366_v24, %v1369_v25 }
  0x5c   :  { %v454_v10 = vsel %vm371_vm6, %v453_v45, %v452_v40  ;;  %v724_v35 = vclz %v989_v5  ;;  %v63_v51 = vmul.f32 %v36_v50, %v1317_v43  ;;  %v81_v32 = vsub.f32 0.0, %v80_v27 }
  0x5d   :  { %v457_v61 = vsel %vm1323_vm7, %v1153_v6, %v454_v10  ;;  %vm174_vm14 = vweird.f32 %v1149_v1  ;;  %vm572_vm15 = vcmp.eq.s32.totalorder %v567_v18, 2  ;;  %vm468_vm0 = vcmp.eq.s32.totalorder %v463_v33, 2 }
  0x5e   :  { %1025 = vcosq.f32 %v457_v61  ;;  %v990_v40 = vadd.s32 4294967294, %v724_v35  ;;  %vm465_vm2 = vcmp.eq.s32.totalorder %v463_v33, 0  ;;  %vm568_vm3 = vcmp.lt.s32.totalorder %v567_v18, 2 }
  0x5f   :  { %v1022_v55 = vpop.eup %1021  ;;  %1027 = vsinq.f32 %v457_v61  ;;  %vm569_vm4 = vcmp.eq.s32.totalorder %v567_v18, 0  ;;  %vm464_vm5 = vcmp.lt.s32.totalorder %v463_v33, 2  ;;  %v712_v52 = vadd.s32 %v1295_v22, %v1293_v20 }
  0x60   :  { %v1024_v63 = vpop.eup %1023  ;;  %v182_v17 = vxor.u32 2147483648, %v1022_v55  ;;  %vm991_vm1 = vcmp.lt.s32.totalorder %v990_v40, 0  ;;  %v1386_v62 = vadd.f32 %v41_v56, %v41_v56  ;;  %v1388_v3 = vadd.f32 %v53_v38, %v47_v7 }
  0x61   :  { %v179_v16 = vxor.u32 2147483648, %v1024_v63  ;;  %v727_v10 = vsel %vm991_vm1, 0, %v990_v40  ;;  %v60_v4 = vadd.f32 %v44_v23, %v44_v23  ;;  %v65_v9 = vmul.f32 %v1338_v58, %v1314_v41 }
  0x62   :  { %v183_v31 = vsel %vm181_vm9, %v182_v17, %v1024_v63  ;;  %v287_v37 = vsel %vm285_vm11, %v182_v17, %v1024_v63  ;;  %v728_v61 = vsub.s32 32, %v727_v10  ;;  %v367_v63 = vmul.f32 0.5, %v365_v47 }
  0x63   :  { %v180_v29 = vsel %vm178_vm8, %v1022_v55, %v179_v16  ;;  %v284_v28 = vsel %vm282_vm10, %v1022_v55, %v179_v16  ;;  %vm461_vm6 = vweird.f32 %v1153_v6  ;;  %v66_v56 = vmul.f32 %v1340_v26, %v1319_v44 }
  0x64   :  { %v184_v42 = vsel %vm177_vm12, %v180_v29, %v183_v31  ;;  %v288_v45 = vsel %vm281_vm13, %v284_v28, %v287_v37  ;;  %v729_v13 = vshll.u32 %v1355_v53, %v727_v10  ;;  %v730_v14 = vshrl.u32 %v712_v52, %v728_v61 }
  0x65   :  { %v185_v50 = vsel %vm174_vm14, nan, %v184_v42  ;;  %v289_v55 = vsel %vm174_vm14, nan, %v288_v45  ;;  %v732_v57 = vsub.s32 4294967266, %v727_v10  ;;  %v70_v16 = vmul.f32 %v1317_v43, %v1317_v43 }
  0x66   :  { %v186_v20 = vmul.f32 %v185_v50, %v81_v32  ;;  %v290_v1 = vmul.f32 %v289_v55, %v80_v27  ;;  %v72_v58 = vmul.f32 %v1314_v41, %v1314_v41  ;;  %v73_v6 = vmul.f32 %v1319_v44, %v1319_v44 }
  0x67   :  { %v368_v17 = vsub.f32 0.0, %v367_v63  ;;  %v1404_v23 = vsub.f32 %v56_v39, %v50_v36  ;;  %v1406_v24 = vsub.f32 0.0, %v60_v4  ;;  %v64_v25 = vadd.f32 %v63_v51, %v1334_v2 }
  0x68   :  { %v1026_v30 = vpop.eup %1025  ;;  %v291_v26 = vmul.f32 %v186_v20, %v1388_v3  ;;  %v292_v53 = vmul.f32 %v290_v1, %v1386_v62  ;;  %v67_v43 = vadd.f32 %v66_v56, %v65_v9  ;;  %v731_v5 = vor.u32 %v730_v14, %v729_v13 }
  0x69   :  { %v1028_v34 = vpop.eup %1027  ;;  %v469_v46 = vxor.u32 2147483648, %v1026_v30  ;;  %v733_v7 = vadd.s32 127, %v732_v57  ;;  %v71_v41 = vadd.f32 %v70_v16, %v1336_v54  ;;  %v74_v27 = vadd.f32 %v73_v6, %v72_v58  ;;  %v652_v58 = vld [vmem:[#allocation2 + $0x28] sm:$0xff] }
  0x6a   :  { %v466_v48 = vxor.u32 2147483648, %v1028_v34  ;;  %v293_v31 = vadd.f32 %v292_v53, %v291_v26  ;;  %v314_v33 = vmul.f32 %v186_v20, %v1404_v23  ;;  %v315_v35 = vmul.f32 %v290_v1, %v1406_v24 }
  0x6b   :  { %v470_v59 = vsel %vm468_vm0, %v469_v46, %v1028_v34  ;;  %v574_v15 = vsel %vm572_vm15, %v469_v46, %v1028_v34  ;;  %v734_v29 = vshll.u32 %v733_v7, 23  ;;  %v738_v28 = vcvt.s32.f32 %v731_v5 }
  0x6c   :  { %v467_v60 = vsel %vm465_vm2, %v1026_v30, %v466_v48  ;;  %v571_v0 = vsel %vm569_vm4, %v1026_v30, %v466_v48  ;;  %v1414_v37 = vsub.f32 %v64_v25, %v67_v43  ;;  %v1416_v38 = vsub.f32 %v71_v41, %v74_v27  ;;  %v328_v25 = vld [vmem:[#allocation2 + $0x40] sm:$0xff]  ;;  %v330_v43 = vld [vmem:[#allocation2 + $0x48] sm:$0xff] }
  0x6d   :  { %v471_v22 = vsel %vm464_vm5, %v467_v60, %v470_v59  ;;  %v575_v11 = vsel %vm568_vm3, %v571_v0, %v574_v15  ;;  %v735_v36 = vor.u32 4788187, %v734_v29  ;;  %v742_v51 = vsub.s32 4, %v1330_v49 }
  0x6e   :  { %v472_v19 = vsel %vm461_vm6, nan, %v471_v22  ;;  %v576_v21 = vsel %vm461_vm6, nan, %v575_v11  ;;  %v974_v40 = vclamps-f32 %v293_v31, 0.5  ;;  %v316_v30 = vadd.f32 %v315_v35, %v314_v33 }
  0x6f   :  { %v473_v44 = vmul.f32 %v472_v19, %v368_v17  ;;  %v577_v18 = vmul.f32 %v576_v21, %v367_v63  ;;  %v736_v54 = vand.u32 2147483647, %v735_v36  ;;  %v338_v45 = vmul.f32 %v186_v20, %v1414_v37  ;;  %v305_v17 = vld [vmem:[#allocation2 + $0x30] sm:$0xff]  ;;  %v307_v19 = vld [vmem:[#allocation2 + $0x38] sm:$0xff] }
  0x70   :  { %v339_v46 = vmul.f32 %v290_v1, %v1416_v38  ;;  %vm658_vm7 = vcmp.lt.s32.totalorder %v1159_v12, 0  ;;  %v296_v50 = vadd.f32 0.5, %v974_v40  ;;  %v975_v52 = vclamps-f32 %v316_v30, 0.5 }
  0x71   :  { %v578_v2 = vmul.f32 %v473_v44, %v1388_v3  ;;  %v579_v39 = vmul.f32 %v577_v18, %v1386_v62  ;;  %v601_v32 = vmul.f32 %v473_v44, %v1404_v23  ;;  %v602_v42 = vmul.f32 %v577_v18, %v1406_v24 }
  0x72   :  { %v739_v34 = vmul.f32 %v738_v28, %v736_v54  ;;  %v743_v48 = vsel %vm658_vm7, %v742_v51, %v1330_v49  ;;  %v625_v59 = vmul.f32 %v473_v44, %v1414_v37  ;;  %v626_v15 = vmul.f32 %v577_v18, %v1416_v38  ;;  %v1432_v28 = vld [vmem:[#allocation2 + $0x50] sm:$0xff]  ;;  %v1436_v51 = vld [vmem:[#allocation2 + $0x60] sm:$0xff] }
  0x73   :  { %v580_v47 = vadd.f32 %v579_v39, %v578_v2  ;;  %v603_v10 = vadd.f32 %v602_v42, %v601_v32  ;;  %vm657_vm8 = vcmp.le.f32.partialorder %v656_v8, 0.7853982  ;;  %v340_v61 = vadd.f32 %v339_v46, %v338_v45  ;;  %v1434_v2 = vld [vmem:[#allocation2 + $0x58] sm:$0xff] }
  0x74   :  { %v740_v55 = vxor.u32 2147483648, %v739_v34  ;;  %v300_v0 = vsub.f32 0.5, %v974_v40  ;;  %v745_v4 = vsel %vm657_vm8, 0, %v743_v48  ;;  %1029 = vlog2.f32 %v296_v50  ;;  %v1438_v40 = vld [vmem:[#allocation2 + $0x68] sm:$0xff]  ;;  %v617_v45 = vld [vmem:[#allocation2 + $0x78] sm:$0xff] }
  0x75   :  { %v985_v63 = vclamps-f32 %v580_v47, 0.5  ;;  %v319_v9 = vadd.f32 0.5, %v975_v52  ;;  %v986_v20 = vclamps-f32 %v603_v10, 0.5  ;;  %v323_v1 = vsub.f32 0.5, %v975_v52  ;;  %v1451_v10 = vld [vmem:[#allocation2 + $0x80] sm:$0xff] }
  0x76   :  { %v741_v60 = vsel %vm658_vm7, %v740_v55, %v739_v34  ;;  %v627_v22 = vadd.f32 %v626_v15, %v625_v59  ;;  %v976_v11 = vclamps-f32 %v340_v61, 0.5  ;;  %v749_v14 = vadd.s32 3, %v745_v4  ;;  %v1443_v34 = vld [vmem:[#allocation2 + $0x70] sm:$0xff]  ;;  %v1453_v55 = vld [vmem:[#allocation2 + $0x88] sm:$0xff] }
  0x77   :  { %v744_v49 = vsel %vm657_vm8, %v1159_v12, %v741_v60  ;;  %v583_v56 = vadd.f32 0.5, %v985_v63  ;;  %v587_v13 = vsub.f32 0.5, %v985_v63  ;;  %v606_v8 = vadd.f32 0.5, %v986_v20 }
  0x78   :  { %1031 = vcosq.f32 %v744_v49  ;;  %v610_v57 = vsub.f32 0.5, %v986_v20  ;;  %v987_v16 = vclamps-f32 %v627_v22, 0.5  ;;  %v343_v6 = vadd.f32 0.5, %v976_v11 }
  0x79   :  { %1033 = vsinq.f32 %v744_v49  ;;  %v347_v21 = vsub.f32 0.5, %v976_v11  ;;  %v750_v26 = vand.u32 3, %v749_v14  ;;  %v854_v53 = vand.u32 3, %v745_v4 }
  0x7a   :  { %1035 = vlog2.f32 %v300_v0  ;;  %v654_v5 = vmul.f32 0.5, %v652_v58  ;;  %v630_v7 = vadd.f32 0.5, %v987_v16  ;;  %v308_v27 = vsub.f32 %v305_v17, %v307_v19 }
  0x7b   :  { %1037 = vlog2.f32 %v319_v9  ;;  %v634_v44 = vsub.f32 0.5, %v987_v16  ;;  %v331_v29 = vsub.f32 %v328_v25, %v330_v43  ;;  %vm755_vm9 = vcmp.eq.s32.totalorder %v750_v26, 2 }
  0x7c   :  { %1039 = vlog2.f32 %v323_v1  ;;  %vm859_vm10 = vcmp.eq.s32.totalorder %v854_v53, 2  ;;  %v655_v33 = vsub.f32 0.0, %v654_v5  ;;  %vm752_vm11 = vcmp.eq.s32.totalorder %v750_v26, 0 }
  0x7d   :  { %1041 = vlog2.f32 %v583_v56  ;;  %vm856_vm12 = vcmp.eq.s32.totalorder %v854_v53, 0  ;;  %vm751_vm13 = vcmp.lt.s32.totalorder %v750_v26, 2  ;;  %vm855_vm14 = vcmp.lt.s32.totalorder %v854_v53, 2 }
  0x7e   :  { %1043 = vlog2.f32 %v587_v13  ;;  %v1030_v41 = vpop.eup %1029  ;;  %vm748_vm15 = vweird.f32 %v1159_v12  ;;  %v1447_v50 = vmul.f32 0.5, %v308_v27  ;;  %v355_v52 = vsub.f32 %v1432_v28, %v1434_v2 }
  0x7f   :  { %1045 = vlog2.f32 %v606_v8  ;;  %v1457_v63 = vmul.f32 0.5, %v331_v29  ;;  %v595_v60 = vsub.f32 %v1436_v51, %v1438_v40  ;;  %v1465_v20 = vmul.f32 0.6931472, %v1030_v41 }
  0x80   :  { %1047 = vlog2.f32 %v610_v57  ;;  %v618_v49 = vsub.f32 %v1443_v34, %v617_v45  ;;  %v642_v8 = vsub.f32 %v1451_v10, %v1453_v55 }
  0x81   :  { %1049 = vlog2.f32 %v343_v6  ;;  %v299_v25 = vmax.f32 %v1465_v20, -100.0  ;;  %v596_v34 = vmul.f32 0.5, %v595_v60 }
  0x82   :  { %v1032_v18 = vpop.eup %1031  ;;  %1051 = vlog2.f32 %v347_v21  ;;  %v619_v45 = vmul.f32 0.5, %v618_v49  ;;  %v643_v28 = vmul.f32 0.5, %v642_v8 }
  0x83   :  { %v1034_v31 = vpop.eup %1033  ;;  %v756_v35 = vxor.u32 2147483648, %v1032_v18  ;;  %1053 = vlog2.f32 %v630_v7 }
  0x84   :  { %v1036_v36 = vpop.eup %1035  ;;  %v753_v39 = vxor.u32 2147483648, %v1034_v31  ;;  %1055 = vlog2.f32 %v634_v44 }
  0x85   :  { %v1038_v54 = vpop.eup %1037  ;;  %v757_v30 = vsel %vm755_vm9, %v756_v35, %v1034_v31  ;;  %v861_v32 = vsel %vm859_vm10, %v756_v35, %v1034_v31  ;;  %v302_v56 = vmul.f32 0.6931472, %v1036_v36 }
  0x86   :  { %v1040_v42 = vpop.eup %1039  ;;  %v754_v46 = vsel %vm752_vm11, %v1032_v18, %v753_v39  ;;  %v858_v47 = vsel %vm856_vm12, %v1032_v18, %v753_v39  ;;  %v321_v13 = vmul.f32 0.6931472, %v1038_v54 }
  0x87   :  { %v1042_v48 = vpop.eup %1041  ;;  %v758_v59 = vsel %vm751_vm13, %v754_v46, %v757_v30  ;;  %v862_v15 = vsel %vm855_vm14, %v858_v47, %v861_v32  ;;  %v325_v14 = vmul.f32 0.6931472, %v1040_v42  ;;  %v303_v27 = vmax.f32 %v302_v56, -100.0  ;;  %v881_v56 = vld [vmem:[#allocation2 + $0x98] sm:$0xff] }
  0x88   :  { %v1044_v61 = vpop.eup %1043  ;;  %v759_v0 = vsel %vm748_vm15, nan, %v758_v59  ;;  %v863_v4 = vsel %vm748_vm15, nan, %v862_v15  ;;  %v585_v16 = vmul.f32 0.6931472, %v1042_v48 }
  0x89   :  { %v1046_v9 = vpop.eup %1045  ;;  %v760_v1 = vmul.f32 %v759_v0, %v655_v33  ;;  %v864_v22 = vmul.f32 %v863_v4, %v654_v5  ;;  %v589_v19 = vmul.f32 0.6931472, %v1044_v61  ;;  %v311_v47 = vsub.f32 %v299_v25, %v303_v27 }
  0x8a   :  { %v1048_v11 = vpop.eup %1047  ;;  %v608_v43 = vmul.f32 0.6931472, %v1046_v9  ;;  %v310_v60 = vadd.f32 %v303_v27, %v299_v25 }
  0x8b   :  { %v1050_v57 = vpop.eup %1049  ;;  %v865_v58 = vmul.f32 %v760_v1, %v1388_v3  ;;  %v866_v12 = vmul.f32 %v864_v22, %v1386_v62  ;;  %v888_v6 = vmul.f32 %v760_v1, %v1404_v23  ;;  %v889_v21 = vmul.f32 %v864_v22, %v1406_v24 }
  0x8c   :  { %v1052_v17 = vpop.eup %1051  ;;  %v912_v26 = vmul.f32 %v760_v1, %v1414_v37  ;;  %v913_v53 = vmul.f32 %v864_v22, %v1416_v38  ;;  %v612_v5 = vmul.f32 0.6931472, %v1048_v11  ;;  %v322_v3 = vmax.f32 %v321_v13, -100.0  ;;  %v879_v11 = vld [vmem:[#allocation2 + $0x90] sm:$0xff] }
  0x8d   :  { %v867_v7 = vadd.f32 %v866_v12, %v865_v58  ;;  %v1054_v41 = vpop.eup %1053  ;;  %v890_v44 = vadd.f32 %v889_v21, %v888_v6  ;;  %v326_v23 = vmax.f32 %v325_v14, -100.0  ;;  %v345_v29 = vmul.f32 0.6931472, %v1050_v57  ;;  %v902_v58 = vld [vmem:[#allocation2 + $0xa0] sm:$0xff]  ;;  %v904_v12 = vld [vmem:[#allocation2 + $0xa8] sm:$0xff]  ;;  %v926_v21 = vld [vmem:[#allocation2 + $0xb0] sm:$0xff] }
  0x8e   :  { %v914_v62 = vadd.f32 %v913_v53, %v912_v26  ;;  %v1056_v18 = vpop.eup %1055  ;;  %v349_v31 = vmul.f32 0.6931472, %v1052_v17  ;;  %v586_v24 = vmax.f32 %v585_v16, -100.0  ;;  %v590_v35 = vmax.f32 %v589_v19, -100.0  ;;  %v928_v26 = vld [vmem:[#allocation2 + $0xb8] sm:$0xff] }
  0x8f   :  { %v996_v33 = vclamps-f32 %v867_v7, 0.5  ;;  %v997_v37 = vclamps-f32 %v890_v44, 0.5  ;;  %v609_v38 = vmax.f32 %v608_v43, -100.0  ;;  %v613_v39 = vmax.f32 %v612_v5, -100.0 }
  0x90   :  { %v998_v36 = vclamps-f32 %v914_v62, 0.5  ;;  %v632_v40 = vmul.f32 0.6931472, %v1054_v41  ;;  %v636_v30 = vmul.f32 0.6931472, %v1056_v18  ;;  %v346_v48 = vmax.f32 %v345_v29, -100.0 }
  0x91   :  { %v870_v54 = vadd.f32 0.5, %v996_v33  ;;  %v874_v51 = vsub.f32 0.5, %v996_v33  ;;  %v893_v32 = vadd.f32 0.5, %v997_v37  ;;  %v897_v42 = vsub.f32 0.5, %v997_v37 }
  0x92   :  { %v917_v46 = vadd.f32 0.5, %v998_v36  ;;  %v921_v59 = vsub.f32 0.5, %v998_v36  ;;  %v334_v15 = vsub.f32 %v322_v3, %v326_v23  ;;  %v350_v61 = vmax.f32 %v349_v31, -100.0 }
  0x93   :  { %1057 = vlog2.f32 %v870_v54  ;;  %v598_v0 = vsub.f32 %v586_v24, %v590_v35  ;;  %v621_v4 = vsub.f32 %v609_v38, %v613_v39  ;;  %v633_v9 = vmax.f32 %v632_v40, -100.0 }
  0x94   :  { %1059 = vlog2.f32 %v874_v51  ;;  %v637_v20 = vmax.f32 %v636_v30, -100.0  ;;  %v356_v1 = vmul.f32 0.5, %v355_v52  ;;  %v312_v49 = vmul.f32 %v311_v47, %v1447_v50 }
  0x95   :  { %1061 = vlog2.f32 %v893_v32  ;;  %v333_v22 = vadd.f32 %v326_v23, %v322_v3  ;;  %v335_v13 = vmul.f32 %v334_v15, %v1457_v63  ;;  %v358_v14 = vsub.f32 %v346_v48, %v350_v61 }
  0x96   :  { %1063 = vlog2.f32 %v897_v42  ;;  %v597_v57 = vadd.f32 %v590_v35, %v586_v24  ;;  %v599_v16 = vmul.f32 %v598_v0, %v596_v34  ;;  %v620_v6 = vadd.f32 %v613_v39, %v609_v38 }
  0x97   :  { %1065 = vlog2.f32 %v917_v46  ;;  %v622_v17 = vmul.f32 %v621_v4, %v619_v45  ;;  %v645_v2 = vsub.f32 %v633_v9, %v637_v20  ;;  %v882_v52 = vsub.f32 %v879_v11, %v881_v56 }
  0x98   :  { %1067 = vlog2.f32 %v921_v59  ;;  %v313_v50 = vadd.f32 %v312_v49, %v310_v60  ;;  %v905_v19 = vsub.f32 %v902_v58, %v904_v12  ;;  %v336_v25 = vadd.f32 %v335_v13, %v333_v22 }
  0x99   :  { %v357_v63 = vadd.f32 %v350_v61, %v346_v48  ;;  %v359_v43 = vmul.f32 %v358_v14, %v356_v1  ;;  %v600_v5 = vadd.f32 %v599_v16, %v597_v57  ;;  %v623_v41 = vadd.f32 %v622_v17, %v620_v6 }
  0x9a   :  { %v644_v27 = vadd.f32 %v637_v20, %v633_v9  ;;  %v646_v3 = vmul.f32 %v645_v2, %v643_v28  ;;  %v883_v10 = vmul.f32 0.5, %v882_v52  ;;  %v929_v55 = vsub.f32 %v926_v21, %v928_v26 }
  0x9b   :  { %v906_v31 = vmul.f32 0.5, %v905_v19  ;;  %v939_v33 = vlaneseq  ;;  %v337_v35 = vadd.f32 %v336_v25, %v313_v50  ;;  %v360_v37 = vadd.f32 %v359_v43, %v357_v63 }
  0x9c   :  { %v624_v54 = vadd.f32 %v623_v41, %v600_v5  ;;  %v647_v51 = vadd.f32 %v646_v3, %v644_v27  ;;  %v930_v47 = vmul.f32 0.5, %v929_v55 }
  0x9d   :  { %v1058_v53 = vpop.eup %1057  ;;  %v940_v48 = vshrl.u32 %v939_v33, 7  ;;  %v361_v4 = vadd.f32 %v360_v37, %v337_v35  ;;  %v942_v22 = vand.u32 127, %v939_v33 }
  0x9e   :  { %v1060_v7 = vpop.eup %1059  ;;  %v872_v44 = vmul.f32 0.6931472, %v1058_v53  ;;  %v648_v9 = vadd.f32 %v647_v51, %v624_v54 }
  0x9f   :  { %v1062_v62 = vpop.eup %1061  ;;  %v876_v18 = vmul.f32 0.6931472, %v1060_v7  ;;  %v946_v11 = vmul.u32 128, %v940_v48 }
  0xa0   :  { %v1064_v8 = vpop.eup %1063  ;;  %v873_v23 = vmax.f32 %v872_v44, -100.0  ;;  %v895_v29 = vmul.f32 0.6931472, %v1062_v62  ;;  %v936_v16 = vadd.f32 %v648_v9, %v361_v4 }
  0xa1   :  { %v1066_v24 = vpop.eup %1065  ;;  %v877_v36 = vmax.f32 %v876_v18, -100.0  ;;  %v899_v38 = vmul.f32 0.6931472, %v1064_v8  ;;  %v947_v58 = vadd.s32 %v946_v11, %v942_v22 }
  0xa2   :  { %v1068_v39 = vpop.eup %1067  ;;  %v896_v40 = vmax.f32 %v895_v29, -100.0  ;;  %v919_v30 = vmul.f32 0.6931472, %v1066_v24 }
  0xa3   :  { %v884_v32 = vadd.f32 %v877_v36, %v873_v23  ;;  %v885_v42 = vsub.f32 %v873_v23, %v877_v36  ;;  %v900_v34 = vmax.f32 %v899_v38, -100.0  ;;  %v923_v45 = vmul.f32 0.6931472, %v1068_v39 }
  0xa4   :  { %v920_v46 = vmax.f32 %v919_v30, -100.0  ;;  %vm948_vm0 = vcmp.lt.s32.totalorder %v947_v58, 6 }
  0xa5   :  { %v886_v59 = vmul.f32 %v885_v42, %v883_v10  ;;  %v907_v15 = vadd.f32 %v900_v34, %v896_v40  ;;  %v908_v61 = vsub.f32 %v896_v40, %v900_v34  ;;  %v924_v0 = vmax.f32 %v923_v45, -100.0 }
  0xa7   :  { %v887_v20 = vadd.f32 %v886_v59, %v884_v32  ;;  %v909_v1 = vmul.f32 %v908_v61, %v906_v31  ;;  %v931_v60 = vadd.f32 %v924_v0, %v920_v46  ;;  %v932_v49 = vsub.f32 %v920_v46, %v924_v0 }
  0xa9   :  { %v910_v56 = vadd.f32 %v909_v1, %v907_v15  ;;  %v933_v13 = vmul.f32 %v932_v49, %v930_v47 }
  0xab   :  { %v911_v14 = vadd.f32 %v910_v56, %v887_v20  ;;  %v934_v57 = vadd.f32 %v933_v13, %v931_v60 }
  0xad   :  { %v935_v12 = vadd.f32 %v934_v57, %v911_v14 }
  0xaf   :  { %v937_v6 = vadd.f32 %v936_v16, %v935_v12 }
  0xb1   :  { %v938_v17 = vsub.f32 0.0, %v937_v6 }
  0xb3   :  { %v949_v28 = vsel %vm948_vm0, %v938_v17, 0.0 }
  0xb4   :  { %950 = vst [vmem:[#allocation5] sm:$0xff] %v949_v28 }
  0xb5   :  { %1102 = shalt.err (!%p1099_p12)
}
  0xb6   :  { %s1103_s24 = scalar_lea.hbm %s1498_s1, 128 }
  0xb7   :  { %p1104_p13 = scmp.ne.s32.totalorder %s1498_s1, %s1103_s24  ;;  %p1107_p0 = scmp.lt.u32.totalorder %s1103_s24, %s1498_s1 }
  0xb9   :  { %p1109_p1 = pnand %p1107_p0, %p1104_p13 }
  0xbb   :  { %1112 = shalt.err (!%p1109_p1)
}
  0xbc   :  { %960 = dma.vmem_to_hbm [thread:$0]  %s958_s20, 128, %s1498_s1, [#allocation4]  }
  0xbd   :  { %1115 = dma.done.wait [#allocation4], 128  }
  0xbe   :  { %1116 = vsyncadd [#allocation4], 4294967168 }
  0xbf   :  { %964 = vsyncpa [#allocation3], 1 }
  0xc0   :  { %965 = vsyncpa [#allocation4], 1 }

</bundles_post_ra>
